<compile_context>
chip_gen: v7x
topology: tpu7x:2x2x1
jax: 0.10.0
libtpu: 0.0.40
codegen_flags: <defaults>
</compile_context>

<pallas_src>
import jax
import jax.numpy as jnp
from jax.experimental import pallas as pl
from jax.experimental.pallas import tpu as pltpu

EPS = 1e-5


def dilconv_forward(x_nchw, w_dw, w_pw, gamma, beta,
                    *, kernel_size=3, stride=1, padding=2, dilation=2):
    """DilConv forward.

    x_nchw : (N, C_in, H, W)  float32
    w_dw   : (KH, KW, C_in)   depthwise weights (groups = C_in)
    w_pw   : (C_in, C_out)    pointwise 1x1 weights
    gamma  : (C_out,)         BN affine scale
    beta   : (C_out,)         BN affine shift
    returns: (N, C_out, H_out, W_out)
    """
    assert stride == 1, "this implementation is specialized to stride=1"
    N, C_in, H, W = x_nchw.shape
    KH = KW = kernel_size
    C_out = w_pw.shape[1]
    H_out = H + 2 * padding - dilation * (KH - 1)
    W_out = W + 2 * padding - dilation * (KW - 1)
    Hp = H + 2 * padding                 # padded height
    Wp = W + 2 * padding                 # padded width
    M = N * H_out * W_out                # BN reduction size

    # bf16 operands are the MXU-native path on v5e/v6e/v7x and halve weight
    # VMEM/DMA; accumulation stays f32.  Kept f32 at toy channel counts so the
    # 5e-3 verification tolerance comfortably holds.
    mm_dtype = jnp.bfloat16 if C_in >= 64 else jnp.float32

    # Row-strip size: fill the MXU M-dim (~256 rows per matmul) while keeping
    # the live f32 accumulator within ~32 vregs (vreg file identical on
    # v5e/v6e/v7x), so no spills and no cross-image stacking is needed.
    target_rows = -(-256 // W_out)
    reg_cap = max(1, (128 * 1024) // (W_out * C_in * 4))
    ROWS = min(H_out, max(8, min(target_rows, reg_cap)))

    # ---- layout glue (XLA): NCHW -> NHWC, channels on the lane dim ----------
    x_nhwc = jnp.transpose(x_nchw.astype(jnp.float32), (0, 2, 3, 1))
    w_taps = w_dw.astype(jnp.float32).reshape(KH * KW, 1, C_in)   # per-tap lane vectors
    w_mm = w_pw.astype(mm_dtype)                                   # (C_in, C_out)

    # ---------- Pass 1: ReLU + depthwise + pointwise + per-channel BN sums ---
    def fused_kernel(x_ref, wtap_ref, wpw_ref, y_ref, st_ref, xr_ref):
        # ReLU once into a zero-haloed scratch; only the halo strips are
        # re-zeroed each grid step (the interior is fully overwritten).
        if padding > 0:
            zrow = jnp.zeros((padding, Wp, C_in), jnp.float32)
            xr_ref[0:padding, :, :] = zrow
            xr_ref[padding + H:Hp, :, :] = zrow
            zcol = jnp.zeros((H, padding, C_in), jnp.float32)
            xr_ref[padding:padding + H, 0:padding, :] = zcol
            xr_ref[padding:padding + H, padding + W:Wp, :] = zcol
        xr_ref[padding:padding + H, padding:padding + W, :] = (
            jnp.maximum(x_ref[0], 0.0))

        taps = [wtap_ref[t] for t in range(KH * KW)]   # each (1, C_in), hoisted

        s1 = jnp.zeros((1, C_out), jnp.float32)
        s2 = jnp.zeros((1, C_out), jnp.float32)
        h0 = 0
        while h0 < H_out:                               # static strip loop
            rows = min(ROWS, H_out - h0)
            # Depthwise dilated conv: 9 shifted FMA taps on the VPU.
            acc = jnp.zeros((rows, W_out, C_in), jnp.float32)
            for kh in range(KH):
                for kw in range(KW):
                    patch = xr_ref[h0 + kh * dilation: h0 + kh * dilation + rows,
                                   kw * dilation: kw * dilation + W_out, :]
                    acc = acc + patch * taps[kh * KW + kw]
            # Pointwise 1x1 conv: direct (rows*W_out, C_in) @ (C_in, C_out)
            # MXU matmul.  The reshape only merges leading dims (lane dim =
            # C_in unchanged), so there is no lane relayout.
            a2 = acc.reshape(rows * W_out, C_in).astype(mm_dtype)
            ys = jnp.dot(a2, wpw_ref[...], preferred_element_type=jnp.float32)
            # Per-channel BN partial sums (kept f32) + strip writeback.
            s1 = s1 + jnp.sum(ys, axis=0, keepdims=True)
            s2 = s2 + jnp.sum(ys * ys, axis=0, keepdims=True)
            y_ref[0, h0:h0 + rows] = ys.reshape(rows, W_out, C_out)
            h0 += rows
        st_ref[0, 0:1, :] = s1
        st_ref[0, 1:2, :] = s2

    y_nhwc, stats = pl.pallas_call(
        fused_kernel,
        out_shape=(
            jax.ShapeDtypeStruct((N, H_out, W_out, C_out), jnp.float32),
            jax.ShapeDtypeStruct((N, 2, C_out), jnp.float32),
        ),
        grid=(N,),
        in_specs=[
            pl.BlockSpec((1, H, W, C_in), lambda n: (n, 0, 0, 0)),
            pl.BlockSpec((KH * KW, 1, C_in), lambda n: (0, 0, 0)),
            pl.BlockSpec((C_in, C_out), lambda n: (0, 0)),
        ],
        out_specs=(
            pl.BlockSpec((1, H_out, W_out, C_out), lambda n: (n, 0, 0, 0)),
            pl.BlockSpec((1, 2, C_out), lambda n: (n, 0, 0)),
        ),
        scratch_shapes=[pltpu.VMEM((Hp, Wp, C_in), jnp.float32)],
        compiler_params=pltpu.CompilerParams(
            dimension_semantics=("parallel",)),
    )(x_nhwc, w_taps, w_mm)

    # ---- tiny reduction of f32 partial sums -> per-channel scale/shift ------
    # NOTE: E[y^2]-E[y]^2 from f32 sums; sums are kept f32 on purpose to avoid
    # cancellation issues (matmul output is f32-accumulated even on the bf16
    # path).
    tot = jnp.sum(stats, axis=0)                       # (2, C_out)
    mean = tot[0] / M
    var = tot[1] / M - mean * mean                     # biased variance
    inv_std = jax.lax.rsqrt(var + EPS)
    scale_c = gamma.astype(jnp.float32) * inv_std
    shift_c = beta.astype(jnp.float32) - mean * scale_c
    scale = scale_c.reshape(1, C_out)
    shift = shift_c.reshape(1, C_out)

    # ---------------- Pass 2: apply BN affine (channels-last) ----------------
    def bn_kernel(y_ref, sc_ref, sh_ref, o_ref):
        o_ref[0] = y_ref[0] * sc_ref[...] + sh_ref[...]

    out_nhwc = pl.pallas_call(
        bn_kernel,
        out_shape=jax.ShapeDtypeStruct((N, H_out, W_out, C_out), jnp.float32),
        grid=(N,),
        in_specs=[
            pl.BlockSpec((1, H_out, W_out, C_out), lambda n: (n, 0, 0, 0)),
            pl.BlockSpec((1, C_out), lambda n: (0, 0)),
            pl.BlockSpec((1, C_out), lambda n: (0, 0)),
        ],
        out_specs=pl.BlockSpec((1, H_out, W_out, C_out), lambda n: (n, 0, 0, 0)),
        compiler_params=pltpu.CompilerParams(
            dimension_semantics=("parallel",)),
    )(y_nhwc, scale, shift)

    # Final NHWC -> NCHW relayout (see TODO about fusing it into bn_kernel).
    return jnp.transpose(out_nhwc, (0, 3, 1, 2))


# ------------------------- pure-JAX reference ---------------------------------
def dilconv_reference(x_nchw, w_dw, w_pw, gamma, beta,
                      *, padding=2, dilation=2):
    C_in = x_nchw.shape[1]
    x = jnp.maximum(x_nchw, 0.0)
    w_dw_oihw = jnp.transpose(w_dw, (2, 0, 1))[:, None, :, :]       # (C_in,1,KH,KW)
    y = jax.lax.conv_general_dilated(
        x, w_dw_oihw, window_strides=(1, 1),
        padding=((padding, padding), (padding, padding)),
        rhs_dilation=(dilation, dilation),
        feature_group_count=C_in,
        dimension_numbers=("NCHW", "OIHW", "NCHW"))
    w_pw_oihw = jnp.transpose(w_pw, (1, 0))[:, :, None, None]       # (C_out,C_in,1,1)
    z = jax.lax.conv_general_dilated(
        y, w_pw_oihw, (1, 1), "VALID",
        dimension_numbers=("NCHW", "OIHW", "NCHW"))
    mean = jnp.mean(z, axis=(0, 2, 3), keepdims=True)
    var = jnp.mean(jnp.square(z - mean), axis=(0, 2, 3), keepdims=True)
    zhat = (z - mean) * jax.lax.rsqrt(var + EPS)
    return gamma[None, :, None, None] * zhat + beta[None, :, None, None]


if __name__ == "__main__":
    key = jax.random.PRNGKey(0)
    k_x, k_dw, k_pw, k_g, k_b = jax.random.split(key, 5)

    N, C_in, H, W = 2, 4, 16, 16
    C_out, K = 8, 3

    x = jax.random.normal(k_x, (N, C_in, H, W), jnp.float32)
    w_dw = jax.random.normal(k_dw, (K, K, C_in), jnp.float32) * 0.3    # depthwise
    w_pw = jax.random.normal(k_pw, (C_in, C_out), jnp.float32) * 0.3   # pointwise
    gamma = 1.0 + 0.1 * jax.random.normal(k_g, (C_out,), jnp.float32)  # BN scale
    beta = 0.1 * jax.random.normal(k_b, (C_out,), jnp.float32)         # BN shift

    out = dilconv_forward(x, w_dw, w_pw, gamma, beta,
                          kernel_size=K, stride=1, padding=2, dilation=2)
    out = jax.block_until_ready(out)

    ref = dilconv_reference(x, w_dw, w_pw, gamma, beta, padding=2, dilation=2)
    assert out.shape == ref.shape == (N, C_out, H, W)
    assert jnp.allclose(out, ref, atol=5e-3, rtol=5e-3), (
        f"max abs err {jnp.max(jnp.abs(out - ref))}")

    print("KERNEL_OK")
</pallas_src>

<mosaic_0001>
module attributes {stable_mosaic.version = 11 : i64} {
  func.func @fused_kernel(%arg0: i32, %arg1: memref<1x16x16x4xf32, #tpu.memory_space<vmem>>, %arg2: memref<9x1x4xf32, #tpu.memory_space<vmem>>, %arg3: memref<4x8xf32, #tpu.memory_space<vmem>>, %arg4: memref<1x16x16x8xf32, #tpu.memory_space<vmem>>, %arg5: memref<1x2x8xf32, #tpu.memory_space<vmem>>, %arg6: memref<20x20x4xf32, #tpu.memory_space<vmem>>) attributes {dimension_semantics = [#tpu.dimension_semantics<parallel>], iteration_bounds = array<i64: 2>, scalar_prefetch = 0 : i64, scratch_operands = 1 : i64, tpu.core_type = #tpu.core_type<tc>, window_params = [{transform_indices = @transform_0, window_bounds = array<i64: 1, 16, 16, 4>}, {pipeline_mode = #tpu.pipeline_mode<synchronous>, transform_indices = @transform_1, window_bounds = array<i64: 9, 1, 4>}, {pipeline_mode = #tpu.pipeline_mode<synchronous>, transform_indices = @transform_2, window_bounds = array<i64: 4, 8>}, {transform_indices = @transform_3, window_bounds = array<i64: 1, 16, 16, 8>}, {transform_indices = @transform_4, window_bounds = array<i64: 1, 2, 8>}]} {
    %cst = arith.constant 0.000000e+00 : f32
    %0 = vector.broadcast %cst : f32 to vector<2x20x4xf32>
    %c0 = arith.constant 0 : index
    %c0_0 = arith.constant 0 : index
    %c0_1 = arith.constant 0 : index
    %1 = vector.load %arg6[%c0, %c0_0, %c0_1] : memref<20x20x4xf32, #tpu.memory_space<vmem>>, vector<2x20x4xf32>
    tpu.vector_store %arg6[%c0, %c0_0, %c0_1], %0 {strides = array<i32>} : memref<20x20x4xf32, #tpu.memory_space<vmem>>, vector<2x20x4xf32>,
    %c18 = arith.constant 18 : index
    %c0_2 = arith.constant 0 : index
    %c0_3 = arith.constant 0 : index
    %2 = vector.load %arg6[%c18, %c0_2, %c0_3] : memref<20x20x4xf32, #tpu.memory_space<vmem>>, vector<2x20x4xf32>
    tpu.vector_store %arg6[%c18, %c0_2, %c0_3], %0 {strides = array<i32>} : memref<20x20x4xf32, #tpu.memory_space<vmem>>, vector<2x20x4xf32>,
    %cst_4 = arith.constant 0.000000e+00 : f32
    %3 = vector.broadcast %cst_4 : f32 to vector<16x2x4xf32>
    %c2 = arith.constant 2 : index
    %c0_5 = arith.constant 0 : index
    %c0_6 = arith.constant 0 : index
    %4 = vector.load %arg6[%c2, %c0_5, %c0_6] : memref<20x20x4xf32, #tpu.memory_space<vmem>>, vector<16x2x4xf32>
    tpu.vector_store %arg6[%c2, %c0_5, %c0_6], %3 {strides = array<i32>} : memref<20x20x4xf32, #tpu.memory_space<vmem>>, vector<16x2x4xf32>,
    %c2_7 = arith.constant 2 : index
    %c18_8 = arith.constant 18 : index
    %c0_9 = arith.constant 0 : index
    %5 = vector.load %arg6[%c2_7, %c18_8, %c0_9] : memref<20x20x4xf32, #tpu.memory_space<vmem>>, vector<16x2x4xf32>
    tpu.vector_store %arg6[%c2_7, %c18_8, %c0_9], %3 {strides = array<i32>} : memref<20x20x4xf32, #tpu.memory_space<vmem>>, vector<16x2x4xf32>,
    %c0_10 = arith.constant 0 : index
    %c0_11 = arith.constant 0 : index
    %c0_12 = arith.constant 0 : index
    %c0_13 = arith.constant 0 : index
    %6 = vector.load %arg1[%c0_10, %c0_11, %c0_12, %c0_13] : memref<1x16x16x4xf32, #tpu.memory_space<vmem>>, vector<1x16x16x4xf32>
    %7 = vector.shape_cast %6 : vector<1x16x16x4xf32> to vector<16x16x4xf32>
    %cst_14 = arith.constant 0.000000e+00 : f32
    %8 = vector.broadcast %cst_14 : f32 to vector<16x16x4xf32>
    %9 = arith.maximumf %7, %8 : vector<16x16x4xf32>
    %c2_15 = arith.constant 2 : index
    %c2_16 = arith.constant 2 : index
    %c0_17 = arith.constant 0 : index
    %10 = vector.load %arg6[%c2_15, %c2_16, %c0_17] : memref<20x20x4xf32, #tpu.memory_space<vmem>>, vector<16x16x4xf32>
    tpu.vector_store %arg6[%c2_15, %c2_16, %c0_17], %9 {strides = array<i32>} : memref<20x20x4xf32, #tpu.memory_space<vmem>>, vector<16x16x4xf32>,
    %c0_18 = arith.constant 0 : index
    %c0_19 = arith.constant 0 : index
    %c0_20 = arith.constant 0 : index
    %11 = vector.load %arg2[%c0_18, %c0_19, %c0_20] : memref<9x1x4xf32, #tpu.memory_space<vmem>>, vector<1x1x4xf32>
    %12 = vector.shape_cast %11 : vector<1x1x4xf32> to vector<1x4xf32>
    %c1 = arith.constant 1 : index
    %c0_21 = arith.constant 0 : index
    %c0_22 = arith.constant 0 : index
    %13 = vector.load %arg2[%c1, %c0_21, %c0_22] : memref<9x1x4xf32, #tpu.memory_space<vmem>>, vector<1x1x4xf32>
    %14 = vector.shape_cast %13 : vector<1x1x4xf32> to vector<1x4xf32>
    %c2_23 = arith.constant 2 : index
    %c0_24 = arith.constant 0 : index
    %c0_25 = arith.constant 0 : index
    %15 = vector.load %arg2[%c2_23, %c0_24, %c0_25] : memref<9x1x4xf32, #tpu.memory_space<vmem>>, vector<1x1x4xf32>
    %16 = vector.shape_cast %15 : vector<1x1x4xf32> to vector<1x4xf32>
    %c3 = arith.constant 3 : index
    %c0_26 = arith.constant 0 : index
    %c0_27 = arith.constant 0 : index
    %17 = vector.load %arg2[%c3, %c0_26, %c0_27] : memref<9x1x4xf32, #tpu.memory_space<vmem>>, vector<1x1x4xf32>
    %18 = vector.shape_cast %17 : vector<1x1x4xf32> to vector<1x4xf32>
    %c4 = arith.constant 4 : index
    %c0_28 = arith.constant 0 : index
    %c0_29 = arith.constant 0 : index
    %19 = vector.load %arg2[%c4, %c0_28, %c0_29] : memref<9x1x4xf32, #tpu.memory_space<vmem>>, vector<1x1x4xf32>
    %20 = vector.shape_cast %19 : vector<1x1x4xf32> to vector<1x4xf32>
    %c5 = arith.constant 5 : index
    %c0_30 = arith.constant 0 : index
    %c0_31 = arith.constant 0 : index
    %21 = vector.load %arg2[%c5, %c0_30, %c0_31] : memref<9x1x4xf32, #tpu.memory_space<vmem>>, vector<1x1x4xf32>
    %22 = vector.shape_cast %21 : vector<1x1x4xf32> to vector<1x4xf32>
    %c6 = arith.constant 6 : index
    %c0_32 = arith.constant 0 : index
    %c0_33 = arith.constant 0 : index
    %23 = vector.load %arg2[%c6, %c0_32, %c0_33] : memref<9x1x4xf32, #tpu.memory_space<vmem>>, vector<1x1x4xf32>
    %24 = vector.shape_cast %23 : vector<1x1x4xf32> to vector<1x4xf32>
    %c7 = arith.constant 7 : index
    %c0_34 = arith.constant 0 : index
    %c0_35 = arith.constant 0 : index
    %25 = vector.load %arg2[%c7, %c0_34, %c0_35] : memref<9x1x4xf32, #tpu.memory_space<vmem>>, vector<1x1x4xf32>
    %26 = vector.shape_cast %25 : vector<1x1x4xf32> to vector<1x4xf32>
    %c8 = arith.constant 8 : index
    %c0_36 = arith.constant 0 : index
    %c0_37 = arith.constant 0 : index
    %27 = vector.load %arg2[%c8, %c0_36, %c0_37] : memref<9x1x4xf32, #tpu.memory_space<vmem>>, vector<1x1x4xf32>
    %28 = vector.shape_cast %27 : vector<1x1x4xf32> to vector<1x4xf32>
    %cst_38 = arith.constant 0.000000e+00 : f32
    %29 = vector.broadcast %cst_38 : f32 to vector<1x8xf32>
    %cst_39 = arith.constant 0.000000e+00 : f32
    %30 = vector.broadcast %cst_39 : f32 to vector<1x8xf32>
    %cst_40 = arith.constant 0.000000e+00 : f32
    %31 = vector.broadcast %cst_40 : f32 to vector<16x16x4xf32>
    %c0_41 = arith.constant 0 : index
    %c0_42 = arith.constant 0 : index
    %c0_43 = arith.constant 0 : index
    %32 = vector.load %arg6[%c0_41, %c0_42, %c0_43] : memref<20x20x4xf32, #tpu.memory_space<vmem>>, vector<16x16x4xf32>
    %33 = vector.shape_cast %12 : vector<1x4xf32> to vector<1x1x4xf32>
    %34 = vector.broadcast %33 : vector<1x1x4xf32> to vector<16x16x4xf32>
    %35 = arith.mulf %32, %34 : vector<16x16x4xf32>
    %36 = arith.addf %31, %35 : vector<16x16x4xf32>
    %c0_44 = arith.constant 0 : index
    %c2_45 = arith.constant 2 : index
    %c0_46 = arith.constant 0 : index
    %37 = vector.load %arg6[%c0_44, %c2_45, %c0_46] : memref<20x20x4xf32, #tpu.memory_space<vmem>>, vector<16x16x4xf32>
    %38 = vector.shape_cast %14 : vector<1x4xf32> to vector<1x1x4xf32>
    %39 = vector.broadcast %38 : vector<1x1x4xf32> to vector<16x16x4xf32>
    %40 = arith.mulf %37, %39 : vector<16x16x4xf32>
    %41 = arith.addf %36, %40 : vector<16x16x4xf32>
    %c0_47 = arith.constant 0 : index
    %c4_48 = arith.constant 4 : index
    %c0_49 = arith.constant 0 : index
    %42 = vector.load %arg6[%c0_47, %c4_48, %c0_49] : memref<20x20x4xf32, #tpu.memory_space<vmem>>, vector<16x16x4xf32>
    %43 = vector.shape_cast %16 : vector<1x4xf32> to vector<1x1x4xf32>
    %44 = vector.broadcast %43 : vector<1x1x4xf32> to vector<16x16x4xf32>
    %45 = arith.mulf %42, %44 : vector<16x16x4xf32>
    %46 = arith.addf %41, %45 : vector<16x16x4xf32>
    %c2_50 = arith.constant 2 : index
    %c0_51 = arith.constant 0 : index
    %c0_52 = arith.constant 0 : index
    %47 = vector.load %arg6[%c2_50, %c0_51, %c0_52] : memref<20x20x4xf32, #tpu.memory_space<vmem>>, vector<16x16x4xf32>
    %48 = vector.shape_cast %18 : vector<1x4xf32> to vector<1x1x4xf32>
    %49 = vector.broadcast %48 : vector<1x1x4xf32> to vector<16x16x4xf32>
    %50 = arith.mulf %47, %49 : vector<16x16x4xf32>
    %51 = arith.addf %46, %50 : vector<16x16x4xf32>
    %c2_53 = arith.constant 2 : index
    %c2_54 = arith.constant 2 : index
    %c0_55 = arith.constant 0 : index
    %52 = vector.load %arg6[%c2_53, %c2_54, %c0_55] : memref<20x20x4xf32, #tpu.memory_space<vmem>>, vector<16x16x4xf32>
    %53 = vector.shape_cast %20 : vector<1x4xf32> to vector<1x1x4xf32>
    %54 = vector.broadcast %53 : vector<1x1x4xf32> to vector<16x16x4xf32>
    %55 = arith.mulf %52, %54 : vector<16x16x4xf32>
    %56 = arith.addf %51, %55 : vector<16x16x4xf32>
    %c2_56 = arith.constant 2 : index
    %c4_57 = arith.constant 4 : index
    %c0_58 = arith.constant 0 : index
    %57 = vector.load %arg6[%c2_56, %c4_57, %c0_58] : memref<20x20x4xf32, #tpu.memory_space<vmem>>, vector<16x16x4xf32>
    %58 = vector.shape_cast %22 : vector<1x4xf32> to vector<1x1x4xf32>
    %59 = vector.broadcast %58 : vector<1x1x4xf32> to vector<16x16x4xf32>
    %60 = arith.mulf %57, %59 : vector<16x16x4xf32>
    %61 = arith.addf %56, %60 : vector<16x16x4xf32>
    %c4_59 = arith.constant 4 : index
    %c0_60 = arith.constant 0 : index
    %c0_61 = arith.constant 0 : index
    %62 = vector.load %arg6[%c4_59, %c0_60, %c0_61] : memref<20x20x4xf32, #tpu.memory_space<vmem>>, vector<16x16x4xf32>
    %63 = vector.shape_cast %24 : vector<1x4xf32> to vector<1x1x4xf32>
    %64 = vector.broadcast %63 : vector<1x1x4xf32> to vector<16x16x4xf32>
    %65 = arith.mulf %62, %64 : vector<16x16x4xf32>
    %66 = arith.addf %61, %65 : vector<16x16x4xf32>
    %c4_62 = arith.constant 4 : index
    %c2_63 = arith.constant 2 : index
    %c0_64 = arith.constant 0 : index
    %67 = vector.load %arg6[%c4_62, %c2_63, %c0_64] : memref<20x20x4xf32, #tpu.memory_space<vmem>>, vector<16x16x4xf32>
    %68 = vector.shape_cast %26 : vector<1x4xf32> to vector<1x1x4xf32>
    %69 = vector.broadcast %68 : vector<1x1x4xf32> to vector<16x16x4xf32>
    %70 = arith.mulf %67, %69 : vector<16x16x4xf32>
    %71 = arith.addf %66, %70 : vector<16x16x4xf32>
    %c4_65 = arith.constant 4 : index
    %c4_66 = arith.constant 4 : index
    %c0_67 = arith.constant 0 : index
    %72 = vector.load %arg6[%c4_65, %c4_66, %c0_67] : memref<20x20x4xf32, #tpu.memory_space<vmem>>, vector<16x16x4xf32>
    %73 = vector.shape_cast %28 : vector<1x4xf32> to vector<1x1x4xf32>
    %74 = vector.broadcast %73 : vector<1x1x4xf32> to vector<16x16x4xf32>
    %75 = arith.mulf %72, %74 : vector<16x16x4xf32>
    %76 = arith.addf %71, %75 : vector<16x16x4xf32>
    %77 = vector.shape_cast %76 : vector<16x16x4xf32> to vector<256x4xf32>
    %c0_68 = arith.constant 0 : index
    %c0_69 = arith.constant 0 : index
    %78 = vector.load %arg3[%c0_68, %c0_69] : memref<4x8xf32, #tpu.memory_space<vmem>>, vector<4x8xf32>
    %cst_70 = arith.constant dense<0.000000e+00> : vector<256x8xf32>
    %79 = tpu.matmul %77, %78, %cst_70 {dimension_numbers = #tpu.dot_dimension_numbers<[1], [0], [0], [1], [0, 0, 1, 1], [], []>} : vector<256x4xf32>, vector<4x8xf32>, vector<256x8xf32> -> vector<256x8xf32>
    %cst_71 = arith.constant dense<0.000000e+00> : vector<8xf32>
    %80 = vector.multi_reduction <add>, %79, %cst_71 [0] : vector<256x8xf32> to vector<8xf32>
    %81 = vector.shape_cast %80 : vector<8xf32> to vector<1x8xf32>
    %82 = arith.addf %29, %81 : vector<1x8xf32>
    %83 = arith.mulf %79, %79 : vector<256x8xf32>
    %cst_72 = arith.constant dense<0.000000e+00> : vector<8xf32>
    %84 = vector.multi_reduction <add>, %83, %cst_72 [0] : vector<256x8xf32> to vector<8xf32>
    %85 = vector.shape_cast %84 : vector<8xf32> to vector<1x8xf32>
    %86 = arith.addf %30, %85 : vector<1x8xf32>
    %87 = vector.shape_cast %79 : vector<256x8xf32> to vector<16x16x8xf32>
    %c0_73 = arith.constant 0 : index
    %c0_74 = arith.constant 0 : index
    %c0_75 = arith.constant 0 : index
    %c0_76 = arith.constant 0 : index
    %88 = vector.load %arg4[%c0_73, %c0_74, %c0_75, %c0_76] : memref<1x16x16x8xf32, #tpu.memory_space<vmem>>, vector<1x16x16x8xf32>
    %89 = vector.shape_cast %88 : vector<1x16x16x8xf32> to vector<16x16x8xf32>
    %90 = vector.shape_cast %87 : vector<16x16x8xf32> to vector<1x16x16x8xf32>
    tpu.vector_store %arg4[%c0_73, %c0_74, %c0_75, %c0_76], %90 {strides = array<i32>} : memref<1x16x16x8xf32, #tpu.memory_space<vmem>>, vector<1x16x16x8xf32>,
    %c0_77 = arith.constant 0 : index
    %c0_78 = arith.constant 0 : index
    %c0_79 = arith.constant 0 : index
    %91 = vector.load %arg5[%c0_77, %c0_78, %c0_79] : memref<1x2x8xf32, #tpu.memory_space<vmem>>, vector<1x1x8xf32>
    %92 = vector.shape_cast %91 : vector<1x1x8xf32> to vector<1x8xf32>
    %93 = vector.shape_cast %82 : vector<1x8xf32> to vector<1x1x8xf32>
    tpu.vector_store %arg5[%c0_77, %c0_78, %c0_79], %93 {strides = array<i32>} : memref<1x2x8xf32, #tpu.memory_space<vmem>>, vector<1x1x8xf32>,
    %c0_80 = arith.constant 0 : index
    %c1_81 = arith.constant 1 : index
    %c0_82 = arith.constant 0 : index
    %94 = vector.load %arg5[%c0_80, %c1_81, %c0_82] : memref<1x2x8xf32, #tpu.memory_space<vmem>>, vector<1x1x8xf32>
    %95 = vector.shape_cast %94 : vector<1x1x8xf32> to vector<1x8xf32>
    %96 = vector.shape_cast %86 : vector<1x8xf32> to vector<1x1x8xf32>
    tpu.vector_store %arg5[%c0_80, %c1_81, %c0_82], %96 {strides = array<i32>} : memref<1x2x8xf32, #tpu.memory_space<vmem>>, vector<1x1x8xf32>,
    return
  }
  func.func @transform_0(%arg0: i32) -> (i32, i32, i32, i32) {
    %c0_i32 = arith.constant 0 : i32
    %c0_i32_0 = arith.constant 0 : i32
    %c0_i32_1 = arith.constant 0 : i32
    %c0_i32_2 = arith.constant 0 : i32
    return %arg0, %c0_i32, %c0_i32_0, %c0_i32_1 : i32, i32, i32, i32
  }
  func.func @transform_1(%arg0: i32) -> (i32, i32, i32) {
    %c0_i32 = arith.constant 0 : i32
    %c0_i32_0 = arith.constant 0 : i32
    %c0_i32_1 = arith.constant 0 : i32
    %c0_i32_2 = arith.constant 0 : i32
    return %c0_i32, %c0_i32_0, %c0_i32_1 : i32, i32, i32
  }
  func.func @transform_2(%arg0: i32) -> (i32, i32) {
    %c0_i32 = arith.constant 0 : i32
    %c0_i32_0 = arith.constant 0 : i32
    %c0_i32_1 = arith.constant 0 : i32
    return %c0_i32, %c0_i32_0 : i32, i32
  }
  func.func @transform_3(%arg0: i32) -> (i32, i32, i32, i32) {
    %c0_i32 = arith.constant 0 : i32
    %c0_i32_0 = arith.constant 0 : i32
    %c0_i32_1 = arith.constant 0 : i32
    %c0_i32_2 = arith.constant 0 : i32
    return %arg0, %c0_i32, %c0_i32_0, %c0_i32_1 : i32, i32, i32, i32
  }
  func.func @transform_4(%arg0: i32) -> (i32, i32, i32) {
    %c0_i32 = arith.constant 0 : i32
    %c0_i32_0 = arith.constant 0 : i32
    %c0_i32_1 = arith.constant 0 : i32
    return %arg0, %c0_i32, %c0_i32_0 : i32, i32, i32
  }
}

</mosaic_0001>

<bundles_post_ra>
// kernel: tpu_custom_call.1
= control target key start
LH: loop header
LB: loop body
LE: loop exit
PB: predicated region body
PF: predicated region fallthrough
CT: control target
= control target key end

     0   :  { %10 = vsyncpa [#allocation4], 0  ;;  %s3437_s0 = inlined_call_operand.vmem [shape: f32[2,16,16,4], index: 0, kind: input, shape index: {}]   ;;  %s3438_s1 = inlined_call_operand.vmem [shape: f32[9,1,4], index: 1, kind: input, shape index: {}]   ;;  %s3439_s2 = inlined_call_operand.vmem [shape: f32[4,8], index: 2, kind: input, shape index: {}]   ;;  %s3440_s3 = inlined_call_operand.vmem [shape: f32[2,16,16,8], index: 3, kind: output, shape index: {0}]   ;;  %s3441_s4 = inlined_call_operand.hbm [shape: f32[2,2,8], index: 4, kind: output, shape index: {1}]  }
   0x1   :  { %12 = vsyncpa [#allocation4 + $0x1], 0  ;;  %s2220_s15 = smov 0   ;;  %s2222_s16 = smov 0  }
   0x2   :  { %s2224_s17 = smov 0   ;;  %s2226_s18 = smov 0  }
   0x3 LB: > { %s2241_s19 = sadd.s32 4294967295, %s2191_s18   ;;  %s1930_s20 = sadd.s32 4294967294, %s2191_s18   ;;  %s2191_s18 = sphi %s2226_s18, %s3447_s18   ;;  %s2187_s17 = sphi %s2224_s17, %s3446_s17   ;;  %s2183_s16 = sphi %s2222_s16, %s3445_s16   ;;  %s2179_s15 = sphi %s2220_s15, %s3444_s15  }
   0x4   : > { %s2245_s21 = sadd.s32 1, %s2191_s18   ;;  %s119_s22 = sadd.s32 1, %s2187_s17 }
   0x5   : > { %s116_s23 = ssub.s32 %s2191_s18, %s2245_s21  ;;  %p129_p0 = scmp.ne.s32.totalorder %s2187_s17, %s2183_s16 }
   0x6   : > { %p117_p1 = scmp.eq.s32.totalorder %s116_s23, 0  ;;  %p130_p2 = scmp.eq.s32.totalorder %s2241_s19, 1 }
   0x7   : > { %p135_p3 = scmp.ne.s32.totalorder %s2183_s16, %s2179_s15  ;;  %p136_p4 = scmp.eq.s32.totalorder %s1930_s20, 1 }
   0x8   : > { %s2256_s24 = scalar_select %p117_p1, %s2187_s17, %s119_s22  }
   0x9   : > { %p2258_p5 = por %p130_p2, %p129_p0  ;;  %p2262_p6 = por %p136_p4, %p135_p3 }
   0xa   : > { %p1933_p7 = scmp.ge.s32.totalorder %s2191_s18, 1  ;;  %p168_p8 = scmp.lt.s32.totalorder %s2191_s18, 3 }
   0xc   : > { %p169_p9 = pnand %p1933_p7, %p168_p8 }
   0xd   : > { %v1290_v0 = vld [vmem:[%s3439_s2] sm:$0xf] (!%p169_p9)  ;;  %vm1387_vm0 = vcmask (!%p169_p9), 1043456   ;;  %p199_p10 = scmp.lt.s32.totalorder (!%p169_p9), %s2241_s19, 1  ;;  %vm209_vm1 = vcmask (!%p169_p9), 31744   ;;  %v2193_v1 = vmov (!%p169_p9), 0.0  }
   0xe   : > { %172 = sbr.rel (%p169_p9) target bundleno = 436 (0x1b4), region = 32  ;;  %2028 = vmatprep.subr.msk.mxu0 (!%p169_p9), %vm1387_vm0, %v1290_v0  ;;  %210 = vst.msk [vmem:[#allocation2] sm:$0xff] (!%p169_p9), %vm209_vm1, %v2193_v1  ;;  %211 = vst.msk [vmem:[#allocation2 + $0x8] sm:$0xff] (!%p169_p9), %vm209_vm1, %v2193_v1  ;;  %vm225_vm2 = vcmask (!%p169_p9), 25600   ;;  %vm212_vm3 = vcmask (!%p169_p9), 27648   ;;  %2078 = vmatprep.subr.msk.mxu1 (!%p169_p9), %vm1387_vm0, %v1290_v0  ;;  %vm1616_vm4 = vcmask (!%p169_p9), 64512  }
   0xf   : > { %214 = vst.msk [vmem:[#allocation2 + $0x18] sm:$0xff] (!%p169_p9), %vm209_vm1, %v2193_v1  ;;  %215 = vst.msk [vmem:[#allocation2 + $0x20] sm:$0xff] (!%p169_p9), %vm209_vm1, %v2193_v1  ;;  %2029 = vmatpush3.msk.msra.mxu0 (!%p169_p9), %vm1387_vm0, %v1290_v0  ;;  %2079 = vmatpush3.msk.msra.mxu1 (!%p169_p9), %vm1387_vm0, %v1290_v0  ;;  %v2336_v2 = vld [vmem:[%s3438_s1] ss:$0 sm:$0xff] (!%p169_p9)  ;;  %v2341_v3 = vld [vmem:[%s3438_s1 + $0x1] ss:$0 sm:$0xff] (!%p169_p9) }
  0x10   : > { %218 = vst.msk [vmem:[#allocation2 + $0x1b0] sm:$0xff] (!%p169_p9), %vm209_vm1, %v2193_v1  ;;  %219 = vst.msk [vmem:[#allocation2 + $0x1b8] sm:$0xff] (!%p169_p9), %vm209_vm1, %v2193_v1  ;;  %v2346_v4 = vld [vmem:[%s3438_s1 + $0x2] ss:$0 sm:$0xff] (!%p169_p9)  ;;  %v2371_v38 = vld [vmem:[%s3438_s1 + $0x3] ss:$0 sm:$0xff] (!%p169_p9) }
  0x11   : > { %221 = vst.msk [vmem:[#allocation2 + $0x1c8] sm:$0xff] (!%p169_p9), %vm209_vm1, %v2193_v1  ;;  %222 = vst.msk [vmem:[#allocation2 + $0x1d0] sm:$0xff] (!%p169_p9), %vm209_vm1, %v2193_v1  ;;  %v2376_v39 = vld [vmem:[%s3438_s1 + $0x4] ss:$0 sm:$0xff] (!%p169_p9)  ;;  %v2385_v47 = vld [vmem:[%s3438_s1 + $0x5] ss:$0 sm:$0xff] (!%p169_p9) }
  0x12   : > { %226 = vst.msk [vmem:[#allocation2 + $0x30] sm:$0x3] (!%p169_p9), %vm225_vm2, %v2193_v1  ;;  %228 = vst.msk [vmem:[#allocation2 + $0x60] sm:$0x3] (!%p169_p9), %vm225_vm2, %v2193_v1  ;;  %v2390_v48 = vld [vmem:[%s3438_s1 + $0x6] ss:$0 sm:$0xff] (!%p169_p9) }
  0x13   : > { %227 = vst.msk [vmem:[#allocation2 + $0x48] sm:$0x3] (!%p169_p9), %vm225_vm2, %v2193_v1  ;;  %229 = vst.msk [vmem:[#allocation2 + $0x78] sm:$0x3] (!%p169_p9), %vm225_vm2, %v2193_v1  ;;  %v2395_v49 = vld [vmem:[%s3438_s1 + $0x7] ss:$0 sm:$0xff] (!%p169_p9) }
  0x14   : > { %230 = vst.msk [vmem:[#allocation2 + $0x90] sm:$0x3] (!%p169_p9), %vm225_vm2, %v2193_v1  ;;  %231 = vst.msk [vmem:[#allocation2 + $0xa8] sm:$0x3] (!%p169_p9), %vm225_vm2, %v2193_v1  ;;  %v2407_v57 = vld [vmem:[%s3438_s1 + $0x8] ss:$0 sm:$0xff] (!%p169_p9) }
  0x15   : > { %s2286_s29 = scalar_select %p199_p10, %s2241_s19, 1  ;;  %232 = vst.msk [vmem:[#allocation2 + $0xc0] sm:$0x3] %vm225_vm2, %v2193_v1  ;;  %233 = vst.msk [vmem:[#allocation2 + $0xd8] sm:$0x3] %vm225_vm2, %v2193_v1  ;;  %v371_v15 = vld [vmem:[#allocation2] sm:$0xff] }
  0x16   : > { %234 = vst.msk [vmem:[#allocation2 + $0xf0] sm:$0x3] %vm225_vm2, %v2193_v1  ;;  %235 = vst.msk [vmem:[#allocation2 + $0x108] sm:$0x3] %vm225_vm2, %v2193_v1  ;;  %v473_v16 = vld [vmem:[#allocation2 + $0x2] sm:$0xff]  ;;  %v409_v20 = vmul.f32 %v2336_v2, %v371_v15  ;;  %v373_v30 = vld [vmem:[#allocation2 + $0x18] sm:$0xff] }
  0x17   : > { %236 = vst.msk [vmem:[#allocation2 + $0x120] sm:$0x3] %vm225_vm2, %v2193_v1  ;;  %237 = vst.msk [vmem:[#allocation2 + $0x138] sm:$0x3] %vm225_vm2, %v2193_v1  ;;  %s1993_s30 = sshll.u32 %s2286_s29, 8  ;;  %v575_v17 = vld [vmem:[#allocation2 + $0x4] sm:$0xff]  ;;  %v511_v21 = vmul.f32 %v2341_v3, %v473_v16  ;;  %v411_v34 = vmul.f32 %v2336_v2, %v373_v30 }
  0x18   : > { %238 = vst.msk [vmem:[#allocation2 + $0x150] sm:$0x3] %vm225_vm2, %v2193_v1  ;;  %239 = vst.msk [vmem:[#allocation2 + $0x168] sm:$0x3] %vm225_vm2, %v2193_v1  ;;  %s2331_s7 = scalar_lea.vmem %s3437_s0, %s1993_s30  ;;  %v613_v22 = vmul.f32 %v2346_v4, %v575_v17  ;;  %v372_v23 = vld [vmem:[#allocation2 + $0x8] sm:$0xff]  ;;  %v475_v35 = vld [vmem:[#allocation2 + $0x1a] sm:$0xff]  ;;  %s3260_s23 = scalar_lea.vmem %s3440_s3, %s1993_s30 }
  0x19   : > { %240 = vst.msk [vmem:[#allocation2 + $0x180] sm:$0x3] %vm225_vm2, %v2193_v1  ;;  %241 = vst.msk [vmem:[#allocation2 + $0x198] sm:$0x3] %vm225_vm2, %v2193_v1  ;;  %v258_v5 = vld [vmem:[%s2331_s7] sm:$0xff]  ;;  %v259_v6 = vld [vmem:[%s2331_s7 + $0x8] sm:$0xff]  ;;  %v410_v26 = vmul.f32 %v2336_v2, %v372_v23  ;;  %v543_v31 = vadd.f32 %v511_v21, %v409_v20  ;;  %v513_v42 = vmul.f32 %v2341_v3, %v475_v35 }
  0x1a   : > { %242 = vst.msk [vmem:[#allocation2 + $0x42] sm:$0x3] %vm225_vm2, %v2193_v1  ;;  %243 = vst.msk [vmem:[#allocation2 + $0x5a] sm:$0x3] %vm225_vm2, %v2193_v1  ;;  %v262_v7 = vld [vmem:[%s2331_s7 + $0x20] sm:$0xff]  ;;  %v263_v8 = vld [vmem:[%s2331_s7 + $0x28] sm:$0xff] }
  0x1b   : > { %244 = vst.msk [vmem:[#allocation2 + $0x72] sm:$0x3] %vm225_vm2, %v2193_v1  ;;  %245 = vst.msk [vmem:[#allocation2 + $0x8a] sm:$0x3] %vm225_vm2, %v2193_v1  ;;  %v290_v9 = vmax.f32 %v258_v5, 0.0  ;;  %v291_v10 = vmax.f32 %v259_v6, 0.0  ;;  %v645_v50 = vadd.f32 %v613_v22, %v543_v31  ;;  %v545_v58 = vadd.f32 %v513_v42, %v411_v34 }
  0x1c   : > { %246 = vst.msk [vmem:[#allocation2 + $0xa2] sm:$0x3] %vm225_vm2, %v2193_v1  ;;  %247 = vst.msk [vmem:[#allocation2 + $0xba] sm:$0x3] %vm225_vm2, %v2193_v1  ;;  %v294_v11 = vmax.f32 %v262_v7, 0.0  ;;  %v260_v12 = vld [vmem:[%s2331_s7 + $0x10] sm:$0xff] }
  0x1d   : > { %248 = vst.msk [vmem:[#allocation2 + $0xd2] sm:$0x3] %vm225_vm2, %v2193_v1  ;;  %249 = vst.msk [vmem:[#allocation2 + $0xea] sm:$0x3] %vm225_vm2, %v2193_v1  ;;  %v261_v13 = vld [vmem:[%s2331_s7 + $0x18] sm:$0xff]  ;;  %v295_v14 = vmax.f32 %v263_v8, 0.0 }
  0x1e   : > { %250 = vst.msk [vmem:[#allocation2 + $0x102] sm:$0x3] %vm225_vm2, %v2193_v1  ;;  %251 = vst.msk [vmem:[#allocation2 + $0x11a] sm:$0x3] %vm225_vm2, %v2193_v1  ;;  %v292_v18 = vmax.f32 %v260_v12, 0.0  ;;  %v293_v19 = vmax.f32 %v261_v13, 0.0 }
  0x1f   : > { %252 = vst.msk [vmem:[#allocation2 + $0x132] sm:$0x3] %vm225_vm2, %v2193_v1  ;;  %253 = vst.msk [vmem:[#allocation2 + $0x14a] sm:$0x3] %vm225_vm2, %v2193_v1  ;;  %v264_v28 = vld [vmem:[%s2331_s7 + $0x30] sm:$0xff]  ;;  %v265_v29 = vld [vmem:[%s2331_s7 + $0x38] sm:$0xff] }
  0x20   : > { %254 = vst.msk [vmem:[#allocation2 + $0x162] sm:$0x3] %vm225_vm2, %v2193_v1  ;;  %255 = vst.msk [vmem:[#allocation2 + $0x17a] sm:$0x3] %vm225_vm2, %v2193_v1  ;;  %v296_v32 = vmax.f32 %v264_v28, 0.0  ;;  %v297_v33 = vmax.f32 %v265_v29, 0.0 }
  0x21   : > { %256 = vst.msk [vmem:[#allocation2 + $0x192] sm:$0x3] %vm225_vm2, %v2193_v1  ;;  %257 = vst.msk [vmem:[#allocation2 + $0x1aa] sm:$0x3] %vm225_vm2, %v2193_v1  ;;  %v577_v36 = vld [vmem:[#allocation2 + $0x1c] sm:$0xff]  ;;  %v267_v53 = vld [vmem:[%s2331_s7 + $0x48] sm:$0xff] }
  0x22   : > { %213 = vst.msk [vmem:[#allocation2 + $0x10] sm:$0xf] %vm212_vm3, %v2193_v1  ;;  %216 = vst.msk [vmem:[#allocation2 + $0x28] sm:$0xf] %vm212_vm3, %v2193_v1  ;;  %v374_v37 = vld [vmem:[#allocation2 + $0x20] sm:$0xff]  ;;  %v615_v51 = vmul.f32 %v2346_v4, %v577_v36  ;;  %v268_v55 = vld [vmem:[%s2331_s7 + $0x50] sm:$0xff] }
  0x23   : > { %220 = vst.msk [vmem:[#allocation2 + $0x1c0] sm:$0xf] %vm212_vm3, %v2193_v1  ;;  %223 = vst.msk [vmem:[#allocation2 + $0x1d8] sm:$0xf] %vm212_vm3, %v2193_v1  ;;  %v412_v43 = vmul.f32 %v2336_v2, %v374_v37  ;;  %v266_v46 = vld [vmem:[%s2331_s7 + $0x40] sm:$0xff]  ;;  %v269_v56 = vld [vmem:[%s2331_s7 + $0x58] sm:$0xff] }
  0x24   : > { %322 = vst.msk [vmem:[#allocation2 + $0x32] sm:$0xff] %vm209_vm1, %v290_v9  ;;  %323 = vst.msk [vmem:[#allocation2 + $0x3a] sm:$0xff] %vm209_vm1, %v291_v10  ;;  %v298_v54 = vmax.f32 %v266_v46, 0.0  ;;  %v299_v60 = vmax.f32 %v267_v53, 0.0  ;;  %v300_v61 = vmax.f32 %v268_v55, 0.0  ;;  %v270_v62 = vld [vmem:[%s2331_s7 + $0x60] sm:$0xff]  ;;  %v647_v22 = vadd.f32 %v615_v51, %v545_v58 }
  0x25   : > { %326 = vst.msk [vmem:[#allocation2 + $0x62] sm:$0xff] %vm209_vm1, %v294_v11  ;;  %327 = vst.msk [vmem:[#allocation2 + $0x6a] sm:$0xff] %vm209_vm1, %v295_v14  ;;  %v271_v63 = vld [vmem:[%s2331_s7 + $0x68] sm:$0xff]  ;;  %v272_v0 = vld [vmem:[%s2331_s7 + $0x70] sm:$0xff]  ;;  %v301_v5 = vmax.f32 %v269_v56, 0.0  ;;  %v302_v6 = vmax.f32 %v270_v62, 0.0 }
  0x26   : > { %324 = vst.msk [vmem:[#allocation2 + $0x4a] sm:$0xff] %vm209_vm1, %v292_v18  ;;  %325 = vst.msk [vmem:[#allocation2 + $0x52] sm:$0xff] %vm209_vm1, %v293_v19  ;;  %v303_v7 = vmax.f32 %v271_v63, 0.0  ;;  %v273_v8 = vld [vmem:[%s2331_s7 + $0x78] sm:$0xff]  ;;  %v274_v9 = vld [vmem:[%s2331_s7 + $0x80] sm:$0xff]  ;;  %v304_v13 = vmax.f32 %v272_v0, 0.0 }
  0x27   : > { %328 = vst.msk [vmem:[#allocation2 + $0x7a] sm:$0xff] %vm209_vm1, %v296_v32  ;;  %329 = vst.msk [vmem:[#allocation2 + $0x82] sm:$0xff] %vm209_vm1, %v297_v33  ;;  %v305_v14 = vmax.f32 %v273_v8, 0.0  ;;  %v306_v15 = vmax.f32 %v274_v9, 0.0  ;;  %s196_s29 = sand.u32 1, %s2183_s16   ;;  %vm1821_vm5 = vcmask 57344  }
  0x28   : > { %330 = vst.msk [vmem:[#allocation2 + $0x92] sm:$0xff] %vm209_vm1, %v298_v54  ;;  %331 = vst.msk [vmem:[#allocation2 + $0x9a] sm:$0xff] %vm209_vm1, %v299_v60  ;;  %s1934_s30 = sshll.u32 %s196_s29, 1  ;;  %s1990_s27 = sshll.u32 %s2241_s19, 5 }
  0x29   : > { %v474_v24 = vld [vmem:[#allocation2 + $0xa] sm:$0xff]  ;;  %v476_v44 = vld [vmem:[#allocation2 + $0x22] sm:$0xff]  ;;  %332 = vst.msk [vmem:[#allocation2 + $0xaa] sm:$0xff] %vm209_vm1, %v300_v61  ;;  %333 = vst.msk [vmem:[#allocation2 + $0xb2] sm:$0xff] %vm209_vm1, %v301_v5  ;;  %s198_s28 = scalar_lea.vmem [#allocation3], %s1934_s30  ;;  %s3395_s9 = scalar_lea.hbm %s3441_s4, %s1990_s27 }
  0x2a   : > { %v576_v25 = vld [vmem:[#allocation2 + $0xc] sm:$0xff]  ;;  %v512_v27 = vmul.f32 %v2341_v3, %v474_v24  ;;  %v578_v45 = vld [vmem:[#allocation2 + $0x24] sm:$0xff]  ;;  %v514_v52 = vmul.f32 %v2341_v3, %v476_v44  ;;  %334 = vst.msk [vmem:[#allocation2 + $0xc2] sm:$0xff] %vm209_vm1, %v302_v6  ;;  %335 = vst.msk [vmem:[#allocation2 + $0xca] sm:$0xff] %vm209_vm1, %v303_v7  ;;  %s1846_s5 = sshll.u32 %s198_s28, 4  ;;  %s1830_s10 = scalar_lea.sflag [#allocation4], %s196_s29  ;;  %s3397_s5 = int_to_ptr.vmem [resolvable:$true] %s1846_s5 }
  0x2b   : > { %v614_v41 = vmul.f32 %v2346_v4, %v576_v25  ;;  %v616_v59 = vmul.f32 %v2346_v4, %v578_v45  ;;  %v677_v10 = vld [vmem:[#allocation2 + $0x30] sm:$0xff]  ;;  %v2441_v28 = vld [vmem:[#allocation2 + $0x3c] sm:$0xff]  ;;  %336 = vst.msk [vmem:[#allocation2 + $0xda] sm:$0xff] %vm209_vm1, %v304_v13  ;;  %337 = vst.msk [vmem:[#allocation2 + $0xe2] sm:$0xff] %vm209_vm1, %v305_v14  ;;  %s2129_s11 = scalar_lea.vmem %s3397_s5, 32  ;;  %s2194_s19 = smov [#allocation3]  }
  0x2c   : > { %v544_v40 = vadd.f32 %v512_v27, %v410_v26  ;;  %v546_v1 = vadd.f32 %v514_v52, %v412_v43  ;;  %v779_v11 = vld [vmem:[#allocation2 + $0x32] sm:$0xff]  ;;  %v715_v16 = vmul.f32 %v2371_v38, %v677_v10  ;;  %v2422_v18 = vld [vmem:[#allocation2 + $0x60] sm:$0xff]  ;;  %338 = vst.msk [vmem:[#allocation2 + $0xf2] sm:$0xff] %vm209_vm1, %v306_v15  ;;  %v2452_v34 = vld [vmem:[#allocation2 + $0x68] sm:$0xff]  ;;  %v920_v37 = vmul.f32 %v2385_v47, %v2441_v28  ;;  %p2130_p11 = scmp.ne.s32.totalorder %s3397_s5, %s2129_s11  ;;  %s2133_s12 = sshll.u32 %s2194_s19, 4  ;;  %s2134_s12 = int_to_ptr.vmem [resolvable:$false] %s2133_s12 }
  0x2d   : > { %v2416_v12 = vld [vmem:[#allocation2 + $0x34] sm:$0xff]  ;;  %v817_v17 = vmul.f32 %v2376_v39, %v779_v11  ;;  %v2424_v19 = vld [vmem:[#allocation2 + $0x62] sm:$0xff]  ;;  %v1022_v24 = vmul.f32 %v2390_v48, %v2422_v18  ;;  %v2454_v35 = vld [vmem:[#allocation2 + $0x6a] sm:$0xff]  ;;  %v413_v45 = vmul.f32 %v2336_v2, %v677_v10  ;;  %v515_v63 = vmul.f32 %v2341_v3, %v779_v11  ;;  %s2135_s13 = scalar_lea.vmem %s2134_s12, 64  ;;  %p2136_p0 = scmp.lt.s32.totalorder %s3397_s5, %s2134_s12 }
  0x2e   : > { %v2426_v20 = vld [vmem:[#allocation2 + $0x64] sm:$0xff]  ;;  %v646_v21 = vadd.f32 %v614_v41, %v544_v40  ;;  %v919_v23 = vmul.f32 %v2385_v47, %v2416_v12  ;;  %v1124_v25 = vmul.f32 %v2395_v49, %v2424_v19  ;;  %v2437_v26 = vld [vmem:[#allocation2 + $0x38] sm:$0xff]  ;;  %v648_v29 = vadd.f32 %v616_v59, %v546_v1  ;;  %v2456_v36 = vld [vmem:[#allocation2 + $0x6c] sm:$0xff]  ;;  %p2131_p12 = pnand %p2130_p11, %p2258_p5  ;;  %p2137_p1 = scmp.lt.s32.totalorder %s2135_s13, %s2129_s11 }
  0x2f   : > { %v2439_v27 = vld [vmem:[#allocation2 + $0x3a] sm:$0xff]  ;;  %v747_v30 = vadd.f32 %v715_v16, %v645_v50  ;;  %v1226_v31 = vmul.f32 %v2407_v57, %v2426_v20  ;;  %v716_v32 = vmul.f32 %v2371_v38, %v2437_v26  ;;  %v1023_v40 = vmul.f32 %v2390_v48, %v2452_v34  ;;  %v2464_v42 = vld [vmem:[#allocation2 + $0x48] sm:$0xff]  ;;  %v2487_v60 = vld [vmem:[#allocation2 + $0x50] sm:$0xff] }
  0x30   : > { %v818_v33 = vmul.f32 %v2376_v39, %v2439_v27  ;;  %v1125_v41 = vmul.f32 %v2395_v49, %v2454_v35  ;;  %v2466_v43 = vld [vmem:[#allocation2 + $0x4a] sm:$0xff]  ;;  %v717_v51 = vmul.f32 %v2371_v38, %v2464_v42  ;;  %v2475_v53 = vld [vmem:[#allocation2 + $0x78] sm:$0xff]  ;;  %v1227_v56 = vmul.f32 %v2407_v57, %v2456_v36  ;;  %v2496_v7 = vld [vmem:[#allocation2 + $0x80] sm:$0xff]  ;;  %p2132_p13 = pneg %p2131_p12  ;;  %p2138_p2 = por %p2137_p1, %p2136_p0 }
  0x31   : > { %v2468_v44 = vld [vmem:[#allocation2 + $0x4c] sm:$0xff]  ;;  %v849_v46 = vadd.f32 %v817_v17, %v747_v30  ;;  %v748_v50 = vadd.f32 %v716_v32, %v646_v21  ;;  %v819_v52 = vmul.f32 %v2376_v39, %v2466_v43  ;;  %v2477_v54 = vld [vmem:[#allocation2 + $0x7a] sm:$0xff]  ;;  %v1024_v59 = vmul.f32 %v2390_v48, %v2475_v53  ;;  %v2506_v17 = vld [vmem:[#allocation2 + $0x82] sm:$0xff] }
  0x32   : > { %v2479_v55 = vld [vmem:[#allocation2 + $0x7c] sm:$0xff]  ;;  %v921_v58 = vmul.f32 %v2385_v47, %v2468_v44  ;;  %v2489_v61 = vld [vmem:[#allocation2 + $0x52] sm:$0xff]  ;;  %v749_v5 = vadd.f32 %v717_v51, %v647_v22  ;;  %v718_v6 = vmul.f32 %v2371_v38, %v2487_v60  ;;  %v1126_v8 = vmul.f32 %v2395_v49, %v2477_v54  ;;  %v2508_v21 = vld [vmem:[#allocation2 + $0x84] sm:$0xff]  ;;  %p2139_p3 = pnand %p2138_p2, %p2132_p13 }
  0x33   : > { %v2491_v62 = vld [vmem:[#allocation2 + $0x54] sm:$0xff]  ;;  %v951_v0 = vadd.f32 %v919_v23, %v849_v46  ;;  %v850_v1 = vadd.f32 %v818_v33, %v748_v50  ;;  %v1228_v9 = vmul.f32 %v2407_v57, %v2479_v55  ;;  %v820_v10 = vmul.f32 %v2376_v39, %v2489_v61 }
  0x34   : > { %v922_v11 = vmul.f32 %v2385_v47, %v2491_v62  ;;  %v851_v15 = vadd.f32 %v819_v52, %v749_v5  ;;  %v750_v16 = vadd.f32 %v718_v6, %v648_v29  ;;  %v1025_v22 = vmul.f32 %v2390_v48, %v2496_v7  ;;  %v2516_v50 = vld [vmem:[#allocation2 + $0x90] sm:$0xff] }
  0x35   : > { %v1054_v13 = vadd.f32 %v1022_v24, %v951_v0  ;;  %v952_v14 = vadd.f32 %v920_v37, %v850_v1  ;;  %v547_v23 = vadd.f32 %v515_v63, %v413_v45  ;;  %v617_v30 = vmul.f32 %v2346_v4, %v2416_v12 }
  0x36   : > { %v719_v32 = vmul.f32 %v2371_v38, %v2422_v18  ;;  %v953_v24 = vadd.f32 %v921_v58, %v851_v15  ;;  %v852_v37 = vadd.f32 %v820_v10, %v750_v16  ;;  %v1127_v29 = vmul.f32 %v2395_v49, %v2506_v17 }
  0x37   : > { %v1156_v33 = vadd.f32 %v1124_v25, %v1054_v13  ;;  %v1055_v46 = vadd.f32 %v1023_v40, %v952_v14  ;;  %v1229_v51 = vmul.f32 %v2407_v57, %v2508_v21  ;;  %v649_v52 = vadd.f32 %v617_v30, %v547_v23  ;;  %v2524_v25 = vld [vmem:[#allocation2 + $0x92] sm:$0xff]  ;;  %v2548_v23 = vld [vmem:[#allocation2 + $0x9a] sm:$0xff] }
  0x38   : > { %v821_v45 = vmul.f32 %v2376_v39, %v2424_v19  ;;  %v1056_v0 = vadd.f32 %v1024_v59, %v953_v24  ;;  %v954_v1 = vadd.f32 %v922_v11, %v852_v37  ;;  %v2526_v40 = vld [vmem:[#allocation2 + $0x94] sm:$0xff]  ;;  %v923_v5 = vmul.f32 %v2385_v47, %v2426_v20  ;;  %v2550_v30 = vld [vmem:[#allocation2 + $0x9c] sm:$0xff] }
  0x39   : > { %v1258_v12 = vadd.f32 %v1226_v31, %v1156_v33  ;;  %v1157_v63 = vadd.f32 %v1125_v41, %v1055_v46  ;;  %v751_v58 = vadd.f32 %v719_v32, %v649_v52  ;;  %v1026_v6 = vmul.f32 %v2390_v48, %v2516_v50  ;;  %v2537_v13 = vld [vmem:[#allocation2 + $0x98] sm:$0xff]  ;;  %v2563_v52 = vld [vmem:[#allocation2 + $0xa8] sm:$0xff] }
  0x3a   : > { %v414_v10 = vmul.f32 %v2336_v2, %v2437_v26  ;;  %v1158_v41 = vadd.f32 %v1126_v8, %v1056_v0  ;;  %v1057_v59 = vadd.f32 %v1025_v22, %v954_v1  ;;  %v516_v11 = vmul.f32 %v2341_v3, %v2439_v27 }
  0x3b   : > { %2030 = vmatprep.mubr.msk.f32.mxu0 %vm209_vm1, %v1258_v12  ;;  %v1259_v31 = vadd.f32 %v1227_v56, %v1157_v63  ;;  %v853_v14 = vadd.f32 %v821_v45, %v751_v58  ;;  %v1128_v15 = vmul.f32 %v2395_v49, %v2524_v25  ;;  %v1230_v16 = vmul.f32 %v2407_v57, %v2526_v40  ;;  %v2576_v58 = vld [vmem:[#allocation2 + $0xaa] sm:$0xff] }
  0x3c   : > { %v618_v26 = vmul.f32 %v2346_v4, %v2441_v28  ;;  %v1260_v56 = vadd.f32 %v1228_v9, %v1158_v41  ;;  %v1159_v8 = vadd.f32 %v1127_v29, %v1057_v59  ;;  %v548_v22 = vadd.f32 %v516_v11, %v414_v10 }
  0x3d   : > { %2031 = vmatmul.mubr.msk.f32.vlgmr.msra.gmra.mrb[0].mxu0 %vm209_vm1, %v1259_v31  ;;  %v720_v27 = vmul.f32 %v2371_v38, %v2452_v34  ;;  %v955_v32 = vadd.f32 %v923_v5, %v853_v14  ;;  %v822_v33 = vmul.f32 %v2376_v39, %v2454_v35  ;;  %v924_v46 = vmul.f32 %v2385_v47, %v2456_v36  ;;  %v2578_v5 = vld [vmem:[#allocation2 + $0xac] sm:$0xff] }
  0x3e   : > { %v1027_v28 = vmul.f32 %v2390_v48, %v2537_v13  ;;  %2033 = vmatprep.mubr.msk.f32.mxu0 %vm209_vm1, %v1260_v56  ;;  %v1261_v9 = vadd.f32 %v1229_v51, %v1159_v8  ;;  %v650_v24 = vadd.f32 %v618_v26, %v548_v22  ;;  %v415_v37 = vmul.f32 %v2336_v2, %v2464_v42  ;;  %v2590_v26 = vld [vmem:[#allocation2 + $0xb0] sm:$0xff] }
  0x3f   : > { %v517_v29 = vmul.f32 %v2341_v3, %v2466_v43  ;;  %v1058_v45 = vadd.f32 %v1026_v6, %v955_v32  ;;  %v1129_v12 = vmul.f32 %v2395_v49, %v2548_v23  ;;  %v1231_v63 = vmul.f32 %v2407_v57, %v2550_v30 }
  0x40   : > { %v619_v0 = vmul.f32 %v2346_v4, %v2468_v44  ;;  %v752_v51 = vadd.f32 %v720_v27, %v650_v24  ;;  %v721_v42 = vmul.f32 %v2371_v38, %v2475_v53  ;;  %v823_v43 = vmul.f32 %v2376_v39, %v2477_v54 }
  0x41   : > { %2034 = vmatmul.mubr.msk.f32.gmra.mrb[2].mxu0 %vm209_vm1, %v1261_v9  ;;  %v549_v1 = vadd.f32 %v517_v29, %v415_v37  ;;  %v1160_v6 = vadd.f32 %v1128_v15, %v1058_v45  ;;  %v925_v10 = vmul.f32 %v2385_v47, %v2479_v55  ;;  %v1028_v44 = vmul.f32 %v2390_v48, %v2563_v52 }
  0x42   : > { %v416_v31 = vmul.f32 %v2336_v2, %v2487_v60  ;;  %v854_v41 = vadd.f32 %v822_v33, %v752_v51  ;;  %v518_v11 = vmul.f32 %v2341_v3, %v2489_v61  ;;  %v620_v14 = vmul.f32 %v2346_v4, %v2491_v62  ;;  %v2600_v33 = vld [vmem:[#allocation2 + $0xb2] sm:$0xff]  ;;  %v2615_v51 = vld [vmem:[#allocation2 + $0xc0] sm:$0xff] }
  0x43   : > { %v651_v59 = vadd.f32 %v619_v0, %v549_v1  ;;  %v1262_v15 = vadd.f32 %v1230_v16, %v1160_v6  ;;  %v1130_v56 = vmul.f32 %v2395_v49, %v2576_v58  ;;  %v1232_v8 = vmul.f32 %v2407_v57, %v2578_v5  ;;  %v2602_v62 = vld [vmem:[#allocation2 + $0xb4] sm:$0xff] }
  0x44   : > { %v722_v60 = vmul.f32 %v2371_v38, %v2496_v7  ;;  %v956_v22 = vadd.f32 %v924_v46, %v854_v41  ;;  %v550_v32 = vadd.f32 %v518_v11, %v416_v31  ;;  %v824_v61 = vmul.f32 %v2376_v39, %v2506_v17  ;;  %v2625_v41 = vld [vmem:[#allocation2 + $0xc2] sm:$0xff] }
  0x45   : > { %v753_v27 = vadd.f32 %v721_v42, %v651_v59  ;;  %2036 = vmatprep.mubr.msk.f32.mxu0 %vm209_vm1, %v1262_v15  ;;  %v926_v16 = vmul.f32 %v2385_v47, %v2508_v21  ;;  %v1029_v9 = vmul.f32 %v2390_v48, %v2590_v26  ;;  %v417_v46 = vmul.f32 %v2336_v2, %v2422_v18 }
  0x46   : > { %v519_v24 = vmul.f32 %v2341_v3, %v2424_v19  ;;  %v1059_v37 = vadd.f32 %v1027_v28, %v956_v22  ;;  %v652_v45 = vadd.f32 %v620_v14, %v550_v32  ;;  %v621_v0 = vmul.f32 %v2346_v4, %v2426_v20  ;;  %v2627_v20 = vld [vmem:[#allocation2 + $0xc4] sm:$0xff] }
  0x47   : > { %v855_v29 = vadd.f32 %v823_v43, %v753_v27  ;;  %v1131_v1 = vmul.f32 %v2395_v49, %v2600_v33  ;;  %v1233_v42 = vmul.f32 %v2407_v57, %v2602_v62  ;;  %v723_v18 = vmul.f32 %v2371_v38, %v2516_v50  ;;  %v2637_v27 = vld [vmem:[#allocation2 + $0xc8] sm:$0xff] }
  0x48   : > { %v551_v6 = vadd.f32 %v519_v24, %v417_v46  ;;  %v1161_v31 = vadd.f32 %v1129_v12, %v1059_v37  ;;  %v754_v28 = vadd.f32 %v722_v60, %v652_v45  ;;  %v825_v43 = vmul.f32 %v2376_v39, %v2524_v25 }
  0x49   : > { %v957_v19 = vadd.f32 %v925_v10, %v855_v29  ;;  %v927_v11 = vmul.f32 %v2385_v47, %v2526_v40  ;;  %v1030_v14 = vmul.f32 %v2390_v48, %v2615_v51  ;;  %v418_v15 = vmul.f32 %v2336_v2, %v2452_v34 }
  0x4a   : > { %v653_v59 = vadd.f32 %v621_v0, %v551_v6  ;;  %v1263_v12 = vadd.f32 %v1231_v63, %v1161_v31  ;;  %v856_v60 = vadd.f32 %v824_v61, %v754_v28  ;;  %v520_v22 = vmul.f32 %v2341_v3, %v2454_v35  ;;  %v2648_v61 = vld [vmem:[#allocation2 + $0xca] sm:$0xff] }
  0x4b   : > { %v1060_v10 = vadd.f32 %v1028_v44, %v957_v19  ;;  %v1132_v46 = vmul.f32 %v2395_v49, %v2625_v41  ;;  %v1234_v24 = vmul.f32 %v2407_v57, %v2627_v20  ;;  %v622_v37 = vmul.f32 %v2346_v4, %v2456_v36  ;;  %v2656_v6 = vld [vmem:[#allocation2 + $0xcc] sm:$0xff] }
  0x4c   : > { %v755_v32 = vadd.f32 %v723_v18, %v653_v59  ;;  %2037 = vmatmul.mubr.msk.f32.gmra.mrb[4].mxu0 %vm209_vm1, %v1263_v12  ;;  %v958_v63 = vadd.f32 %v926_v16, %v856_v60  ;;  %v552_v44 = vadd.f32 %v520_v22, %v418_v15  ;;  %v724_v35 = vmul.f32 %v2371_v38, %v2537_v13  ;;  %v2666_v15 = vld [vmem:[#allocation2 + $0xd8] sm:$0xff] }
  0x4d   : > { %v1162_v34 = vadd.f32 %v1130_v56, %v1060_v10  ;;  %v826_v45 = vmul.f32 %v2376_v39, %v2548_v23  ;;  %v928_v0 = vmul.f32 %v2385_v47, %v2550_v30  ;;  %v1031_v36 = vmul.f32 %v2390_v48, %v2637_v27  ;;  %v2677_v60 = vld [vmem:[#allocation2 + $0xda] sm:$0xff] }
  0x4e   : > { %v857_v29 = vadd.f32 %v825_v43, %v755_v32  ;;  %v1061_v16 = vadd.f32 %v1029_v9, %v958_v63  ;;  %v654_v18 = vadd.f32 %v622_v37, %v552_v44  ;;  %v419_v31 = vmul.f32 %v2336_v2, %v2475_v53  ;;  %v2679_v22 = vld [vmem:[#allocation2 + $0xdc] sm:$0xff] }
  0x4f   : > { %v1264_v56 = vadd.f32 %v1232_v8, %v1162_v34  ;;  %v1133_v28 = vmul.f32 %v2395_v49, %v2648_v61  ;;  %v521_v43 = vmul.f32 %v2341_v3, %v2477_v54  ;;  %v623_v59 = vmul.f32 %v2346_v4, %v2479_v55 }
  0x50   : > { %v959_v19 = vadd.f32 %v927_v11, %v857_v29  ;;  %v1163_v8 = vadd.f32 %v1131_v1, %v1061_v16  ;;  %v756_v9 = vadd.f32 %v724_v35, %v654_v18  ;;  %v1235_v12 = vmul.f32 %v2407_v57, %v2656_v6  ;;  %v2689_v29 = vld [vmem:[#allocation2 + $0xe0] sm:$0xff] }
  0x51   : > { %2039 = vmatprep.mubr.msk.f32.mxu0 %vm209_vm1, %v1264_v56  ;;  %v725_v53 = vmul.f32 %v2371_v38, %v2563_v52  ;;  %v553_v10 = vadd.f32 %v521_v43, %v419_v31  ;;  %v827_v54 = vmul.f32 %v2376_v39, %v2576_v58  ;;  %v929_v55 = vmul.f32 %v2385_v47, %v2578_v5  ;;  %v275_v56 = vld [vmem:[%s2331_s7 + $0x88] sm:$0xff] }
  0x52   : > { %v1062_v11 = vadd.f32 %v1030_v14, %v959_v19  ;;  %v1265_v1 = vadd.f32 %v1233_v42, %v1163_v8  ;;  %v858_v32 = vadd.f32 %v826_v45, %v756_v9  ;;  %v1032_v37 = vmul.f32 %v2390_v48, %v2666_v15  ;;  %v2701_v31 = vld [vmem:[#allocation2 + $0xe2] sm:$0xff] }
  0x53   : > { %v420_v34 = vmul.f32 %v2336_v2, %v2496_v7  ;;  %v655_v63 = vadd.f32 %v623_v59, %v553_v10  ;;  %v522_v44 = vmul.f32 %v2341_v3, %v2506_v17  ;;  %v624_v35 = vmul.f32 %v2346_v4, %v2508_v21  ;;  %v2703_v19 = vld [vmem:[#allocation2 + $0xe4] sm:$0xff] }
  0x54   : > { %v1164_v14 = vadd.f32 %v1132_v46, %v1062_v11  ;;  %2040 = vmatmul.mubr.msk.f32.gmra.mrb[6].mxu0 %vm209_vm1, %v1265_v1  ;;  %v960_v42 = vadd.f32 %v928_v0, %v858_v32  ;;  %v1134_v45 = vmul.f32 %v2395_v49, %v2677_v60  ;;  %v1236_v7 = vmul.f32 %v2407_v57, %v2679_v22 }
  0x55   : > { %v726_v46 = vmul.f32 %v2371_v38, %v2590_v26  ;;  %v757_v17 = vadd.f32 %v725_v53, %v655_v63  ;;  %v554_v18 = vadd.f32 %v522_v44, %v420_v34  ;;  %v828_v21 = vmul.f32 %v2376_v39, %v2600_v33 }
  0x56   : > { %v1266_v16 = vadd.f32 %v1234_v24, %v1164_v14  ;;  %v1063_v0 = vadd.f32 %v1031_v36, %v960_v42  ;;  %v930_v43 = vmul.f32 %v2385_v47, %v2602_v62  ;;  %v1033_v59 = vmul.f32 %v2390_v48, %v2689_v29 }
  0x57   : > { %v307_v8 = vmax.f32 %v275_v56, 0.0  ;;  %v859_v24 = vadd.f32 %v827_v54, %v757_v17  ;;  %v656_v9 = vadd.f32 %v624_v35, %v554_v18  ;;  %v421_v53 = vmul.f32 %v2336_v2, %v2516_v50 }
  0x58   : > { %2042 = vmatprep.mubr.msk.f32.mxu0 %vm209_vm1, %v1266_v16  ;;  %v523_v11 = vmul.f32 %v2341_v3, %v2524_v25  ;;  %v1165_v10 = vadd.f32 %v1133_v28, %v1063_v0  ;;  %v1135_v36 = vmul.f32 %v2395_v49, %v2701_v31  ;;  %v1237_v1 = vmul.f32 %v2407_v57, %v2703_v19  ;;  %v2723_v28 = vld [vmem:[#allocation2 + $0xf0] sm:$0xff]  ;;  %v277_v16 = vld [vmem:[%s2331_s7 + $0x98] sm:$0xff] }
  0x59   : > { %339 = vst.msk [vmem:[#allocation2 + $0xfa] sm:$0xff] %vm209_vm1, %v307_v8  ;;  %v625_v54 = vmul.f32 %v2346_v4, %v2526_v40  ;;  %v961_v32 = vadd.f32 %v929_v55, %v859_v24  ;;  %v758_v34 = vadd.f32 %v726_v46, %v656_v9  ;;  %v727_v25 = vmul.f32 %v2371_v38, %v2615_v51  ;;  %v276_v46 = vld [vmem:[%s2331_s7 + $0x90] sm:$0xff] }
  0x5a   : > { %v555_v50 = vadd.f32 %v523_v11, %v421_v53  ;;  %v1267_v14 = vadd.f32 %v1235_v12, %v1165_v10  ;;  %v829_v63 = vmul.f32 %v2376_v39, %v2625_v41  ;;  %v931_v44 = vmul.f32 %v2385_v47, %v2627_v20 }
  0x5b   : > { %v422_v35 = vmul.f32 %v2336_v2, %v2537_v13  ;;  %v1064_v56 = vadd.f32 %v1032_v37, %v961_v32  ;;  %v860_v40 = vadd.f32 %v828_v21, %v758_v34  ;;  %v524_v42 = vmul.f32 %v2341_v3, %v2548_v23  ;;  %v2744_v23 = vld [vmem:[#allocation2 + $0xf2] sm:$0xff] }
  0x5c   : > { %v657_v55 = vadd.f32 %v625_v54, %v555_v50  ;;  %2043 = vmatmul.mubr.msk.f32.gmra.mrb[8].mxu0 %vm209_vm1, %v1267_v14  ;;  %v1034_v12 = vmul.f32 %v2390_v48, %v2723_v28  ;;  %v626_v17 = vmul.f32 %v2346_v4, %v2550_v30  ;;  %v728_v18 = vmul.f32 %v2371_v38, %v2637_v27 }
  0x5d   : > { %v830_v13 = vmul.f32 %v2376_v39, %v2648_v61  ;;  %v1166_v37 = vadd.f32 %v1134_v45, %v1064_v56  ;;  %v962_v21 = vadd.f32 %v930_v43, %v860_v40  ;;  %v556_v8 = vadd.f32 %v524_v42, %v422_v35 }
  0x5e   : > { %v759_v0 = vadd.f32 %v727_v25, %v657_v55  ;;  %v308_v24 = vmax.f32 %v276_v46, 0.0  ;;  %v309_v9 = vmax.f32 %v277_v16, 0.0  ;;  %v423_v53 = vmul.f32 %v2336_v2, %v2563_v52 }
  0x5f   : > { %v525_v30 = vmul.f32 %v2341_v3, %v2576_v58  ;;  %v1268_v11 = vadd.f32 %v1236_v7, %v1166_v37  ;;  %v1065_v10 = vadd.f32 %v1033_v59, %v962_v21  ;;  %v658_v34 = vadd.f32 %v626_v17, %v556_v8  ;;  %v278_v17 = vld [vmem:[%s2331_s7 + $0xa0] sm:$0xff] }
  0x60   : > { %v861_v54 = vadd.f32 %v829_v63, %v759_v0  ;;  %v2750_v32 = vld [vmem:[#allocation2 + $0xf4] sm:$0xff]  ;;  %v1136_v50 = vmul.f32 %v2395_v49, %v2744_v23  ;;  %v932_v52 = vmul.f32 %v2385_v47, %v2656_v6  ;;  %v2762_v58 = vld [vmem:[#allocation2 + $0xfc] sm:$0xff]  ;;  %340 = vst.msk [vmem:[#allocation2 + $0x10a] sm:$0xff] %vm209_vm1, %v308_v24  ;;  %341 = vst.msk [vmem:[#allocation2 + $0x112] sm:$0xff] %vm209_vm1, %v309_v9  ;;  %v310_v9 = vmax.f32 %v278_v17, 0.0 }
  0x61   : > { %v2752_v45 = vld [vmem:[#allocation2 + $0xf8] sm:$0xff]  ;;  %v1238_v25 = vmul.f32 %v2407_v57, %v2750_v32  ;;  %v557_v7 = vadd.f32 %v525_v30, %v423_v53  ;;  %2045 = vmatprep.mubr.msk.f32.mxu0 %vm209_vm1, %v1268_v11  ;;  %v1167_v59 = vadd.f32 %v1135_v36, %v1065_v10  ;;  %v760_v63 = vadd.f32 %v728_v18, %v658_v34  ;;  %v279_v18 = vld [vmem:[%s2331_s7 + $0xa8] sm:$0xff] }
  0x62   : > { %v2754_v43 = vld [vmem:[#allocation2 + $0xfa] sm:$0xff]  ;;  %v963_v14 = vadd.f32 %v931_v44, %v861_v54  ;;  %v1035_v35 = vmul.f32 %v2390_v48, %v2752_v45  ;;  %v1239_v40 = vmul.f32 %v2407_v57, %v2762_v58  ;;  %v627_v55 = vmul.f32 %v2346_v4, %v2578_v5  ;;  %342 = vst.msk [vmem:[#allocation2 + $0x122] sm:$0xff] %vm209_vm1, %v310_v9 }
  0x63   : > { %v1137_v56 = vmul.f32 %v2395_v49, %v2754_v43  ;;  %v729_v42 = vmul.f32 %v2371_v38, %v2666_v15  ;;  %v1269_v46 = vadd.f32 %v1237_v1, %v1167_v59  ;;  %v862_v36 = vadd.f32 %v830_v13, %v760_v63 }
  0x64   : > { %v1066_v16 = vadd.f32 %v1034_v12, %v963_v14  ;;  %v424_v44 = vmul.f32 %v2336_v2, %v2590_v26  ;;  %v659_v37 = vadd.f32 %v627_v55, %v557_v7  ;;  %v831_v21 = vmul.f32 %v2376_v39, %v2677_v60 }
  0x65   : > { %v933_v0 = vmul.f32 %v2385_v47, %v2679_v22  ;;  %v526_v5 = vmul.f32 %v2341_v3, %v2600_v33  ;;  %2046 = vmatmul.mubr.msk.f32.gmra.mrb[10].mxu0 %vm209_vm1, %v1269_v46  ;;  %v964_v12 = vadd.f32 %v932_v52, %v862_v36  ;;  %v628_v13 = vmul.f32 %v2346_v4, %v2602_v62 }
  0x66   : > { %v1168_v1 = vadd.f32 %v1136_v50, %v1066_v16  ;;  %v730_v26 = vmul.f32 %v2371_v38, %v2689_v29  ;;  %v761_v8 = vadd.f32 %v729_v42, %v659_v37  ;;  %v311_v53 = vmax.f32 %v279_v18, 0.0 }
  0x67   : > { %v558_v24 = vadd.f32 %v526_v5, %v424_v44  ;;  %v1067_v11 = vadd.f32 %v1035_v35, %v964_v12  ;;  %v2792_v10 = vld [vmem:[#allocation2 + $0x108] sm:$0xff]  ;;  %v425_v34 = vmul.f32 %v2336_v2, %v2615_v51  ;;  %v527_v62 = vmul.f32 %v2341_v3, %v2625_v41  ;;  %v2806_v7 = vld [vmem:[#allocation2 + $0x110] sm:$0xff]  ;;  %v281_v5 = vld [vmem:[%s2331_s7 + $0xb8] sm:$0xff] }
  0x68   : > { %v1270_v30 = vadd.f32 %v1238_v25, %v1168_v1  ;;  %v2794_v54 = vld [vmem:[#allocation2 + $0x10a] sm:$0xff]  ;;  %v863_v50 = vadd.f32 %v831_v21, %v761_v8  ;;  %v1036_v52 = vmul.f32 %v2390_v48, %v2792_v10  ;;  %v832_v25 = vmul.f32 %v2376_v39, %v2701_v31  ;;  %343 = vst.msk [vmem:[#allocation2 + $0x12a] sm:$0xff] %vm209_vm1, %v311_v53  ;;  %v2817_v55 = vld [vmem:[#allocation2 + $0x112] sm:$0xff] }
  0x69   : > { %v2796_v33 = vld [vmem:[#allocation2 + $0x10c] sm:$0xff]  ;;  %v1169_v59 = vadd.f32 %v1137_v56, %v1067_v11  ;;  %v1138_v51 = vmul.f32 %v2395_v49, %v2794_v54  ;;  %v660_v41 = vadd.f32 %v628_v13, %v558_v24  ;;  %v934_v14 = vmul.f32 %v2385_v47, %v2703_v19  ;;  %v2844_v53 = vld [vmem:[#allocation2 + $0x120] sm:$0xff] }
  0x6a   : > { %2048 = vmatprep.mubr.msk.f32.mxu0 %vm209_vm1, %v1270_v30  ;;  %v965_v63 = vadd.f32 %v933_v0, %v863_v50  ;;  %v1240_v35 = vmul.f32 %v2407_v57, %v2796_v33  ;;  %v559_v42 = vadd.f32 %v527_v62, %v425_v34  ;;  %v629_v46 = vmul.f32 %v2346_v4, %v2627_v20  ;;  %v280_v0 = vld [vmem:[%s2331_s7 + $0xb0] sm:$0xff]  ;;  %v2846_v30 = vld [vmem:[#allocation2 + $0x122] sm:$0xff] }
  0x6b   : > { %v1271_v56 = vadd.f32 %v1239_v40, %v1169_v59  ;;  %v762_v16 = vadd.f32 %v730_v26, %v660_v41  ;;  %v1037_v36 = vmul.f32 %v2390_v48, %v2806_v7  ;;  %v731_v44 = vmul.f32 %v2371_v38, %v2723_v28  ;;  %v2838_v26 = vld [vmem:[#allocation2 + $0x114] sm:$0xff] }
  0x6c   : > { %v1068_v17 = vadd.f32 %v1036_v52, %v965_v63  ;;  %v661_v18 = vadd.f32 %v629_v46, %v559_v42  ;;  %v833_v37 = vmul.f32 %v2376_v39, %v2744_v23  ;;  %v426_v21 = vmul.f32 %v2336_v2, %v2637_v27 }
  0x6d   : > { %2049 = vmatmul.mubr.msk.f32.gmra.mrb[12].mxu0 %vm209_vm1, %v1271_v56  ;;  %v864_v20 = vadd.f32 %v832_v25, %v762_v16  ;;  %v1139_v40 = vmul.f32 %v2395_v49, %v2817_v55  ;;  %v528_v1 = vmul.f32 %v2341_v3, %v2648_v61  ;;  %v630_v12 = vmul.f32 %v2346_v4, %v2656_v6 }
  0x6e   : > { %v1170_v13 = vadd.f32 %v1138_v51, %v1068_v17  ;;  %v763_v8 = vadd.f32 %v731_v44, %v661_v18  ;;  %v935_v27 = vmul.f32 %v2385_v47, %v2750_v32  ;;  %v732_v24 = vmul.f32 %v2371_v38, %v2752_v45 }
  0x6f   : > { %v966_v9 = vadd.f32 %v934_v14, %v864_v20  ;;  %v560_v11 = vadd.f32 %v528_v1, %v426_v21  ;;  %v312_v61 = vmax.f32 %v280_v0, 0.0  ;;  %v313_v34 = vmax.f32 %v281_v5, 0.0  ;;  %v2852_v59 = vld [vmem:[#allocation2 + $0x124] sm:$0xff] }
  0x70   : > { %v1272_v62 = vadd.f32 %v1240_v35, %v1170_v13  ;;  %v865_v6 = vadd.f32 %v833_v37, %v763_v8  ;;  %v1038_v50 = vmul.f32 %v2390_v48, %v2844_v53  ;;  %v1241_v25 = vmul.f32 %v2407_v57, %v2838_v26  ;;  %v2856_v14 = vld [vmem:[#allocation2 + $0x128] sm:$0xff] }
  0x71   : > { %v1069_v52 = vadd.f32 %v1037_v36, %v966_v9  ;;  %v662_v51 = vadd.f32 %v630_v12, %v560_v11  ;;  %v834_v41 = vmul.f32 %v2376_v39, %v2754_v43  ;;  %344 = vst.msk [vmem:[#allocation2 + $0x13a] sm:$0xff] %vm209_vm1, %v312_v61  ;;  %345 = vst.msk [vmem:[#allocation2 + $0x142] sm:$0xff] %vm209_vm1, %v313_v34  ;;  %v2867_v36 = vld [vmem:[#allocation2 + $0x12a] sm:$0xff] }
  0x72   : > { %2051 = vmatprep.mubr.msk.f32.mxu0 %vm209_vm1, %v1272_v62  ;;  %v967_v63 = vadd.f32 %v935_v27, %v865_v6  ;;  %v1140_v35 = vmul.f32 %v2395_v49, %v2846_v30  ;;  %v936_v42 = vmul.f32 %v2385_v47, %v2762_v58  ;;  %v427_v46 = vmul.f32 %v2336_v2, %v2666_v15  ;;  %v283_v1 = vld [vmem:[%s2331_s7 + $0xc8] sm:$0xff] }
  0x73   : > { %v1171_v56 = vadd.f32 %v1139_v40, %v1069_v52  ;;  %v764_v16 = vadd.f32 %v732_v24, %v662_v51  ;;  %v529_v44 = vmul.f32 %v2341_v3, %v2677_v60  ;;  %v631_v17 = vmul.f32 %v2346_v4, %v2679_v22  ;;  %v282_v60 = vld [vmem:[%s2331_s7 + $0xc0] sm:$0xff]  ;;  %v2885_v13 = vld [vmem:[#allocation2 + $0x12c] sm:$0xff] }
  0x74   : > { %v1070_v18 = vadd.f32 %v1038_v50, %v967_v63  ;;  %v1242_v37 = vmul.f32 %v2407_v57, %v2852_v59  ;;  %v1039_v21 = vmul.f32 %v2390_v48, %v2856_v14  ;;  %v733_v15 = vmul.f32 %v2371_v38, %v2792_v10 }
  0x75   : > { %v1273_v0 = vadd.f32 %v1241_v25, %v1171_v56  ;;  %v866_v5 = vadd.f32 %v834_v41, %v764_v16  ;;  %v561_v20 = vadd.f32 %v529_v44, %v427_v46  ;;  %v428_v40 = vmul.f32 %v2336_v2, %v2689_v29 }
  0x76   : > { %v1172_v12 = vadd.f32 %v1140_v35, %v1070_v18  ;;  %v1141_v22 = vmul.f32 %v2395_v49, %v2867_v36  ;;  %v530_v8 = vmul.f32 %v2341_v3, %v2701_v31  ;;  %v632_v27 = vmul.f32 %v2346_v4, %v2703_v19 }
  0x77   : > { %2052 = vmatmul.mubr.msk.f32.gmra.mrb[14].mxu0 %vm209_vm1, %v1273_v0  ;;  %v968_v24 = vadd.f32 %v936_v42, %v866_v5  ;;  %v663_v9 = vadd.f32 %v631_v17, %v561_v20  ;;  %v835_v29 = vmul.f32 %v2376_v39, %v2794_v54  ;;  %v734_v11 = vmul.f32 %v2371_v38, %v2806_v7 }
  0x78   : > { %v1274_v61 = vadd.f32 %v1242_v37, %v1172_v12  ;;  %v2896_v34 = vld [vmem:[#allocation2 + $0x138] sm:$0xff]  ;;  %v562_v62 = vadd.f32 %v530_v8, %v428_v40  ;;  %v314_v6 = vmax.f32 %v282_v60, 0.0  ;;  %v315_v50 = vmax.f32 %v283_v1, 0.0  ;;  %v2909_v63 = vld [vmem:[#allocation2 + $0x140] sm:$0xff]  ;;  %v284_v12 = vld [vmem:[%s2331_s7 + $0xd0] sm:$0xff] }
  0x79   : > { %v1071_v3 = vadd.f32 %v1039_v21, %v968_v24  ;;  %v1243_v4 = vmul.f32 %v2407_v57, %v2885_v13  ;;  %v765_v31 = vadd.f32 %v733_v15, %v663_v9  ;;  %v937_v19 = vmul.f32 %v2385_v47, %v2796_v33  ;;  %v2902_v52 = vld [vmem:[#allocation2 + $0x13a] sm:$0xff]  ;;  %v2921_v18 = vld [vmem:[#allocation2 + $0x142] sm:$0xff] }
  0x7a   : > { %2054 = vmatprep.mubr.msk.f32.mxu1 %vm209_vm1, %v1274_v61  ;;  %v664_v25 = vadd.f32 %v632_v27, %v562_v62  ;;  %v836_v51 = vmul.f32 %v2376_v39, %v2817_v55  ;;  %v938_v41 = vmul.f32 %v2385_v47, %v2838_v26  ;;  %346 = vst.msk [vmem:[#allocation2 + $0x152] sm:$0xff] %vm209_vm1, %v314_v6  ;;  %347 = vst.msk [vmem:[#allocation2 + $0x15a] sm:$0xff] %vm209_vm1, %v315_v50  ;;  %v2919_v44 = vld [vmem:[#allocation2 + $0x13c] sm:$0xff]  ;;  %v2957_v9 = vld [vmem:[#allocation2 + $0x144] sm:$0xff] }
  0x7b   : > { %v1173_v35 = vadd.f32 %v1141_v22, %v1071_v3  ;;  %v867_v42 = vadd.f32 %v835_v29, %v765_v31  ;;  %v1040_v46 = vmul.f32 %v2390_v48, %v2896_v34  ;;  %v429_v56 = vmul.f32 %v2336_v2, %v2723_v28  ;;  %v2926_v37 = vld [vmem:[%s3438_s1 + $0x1] ss:$0 sm:$0xff]  ;;  %v2933_v2 = vld [vmem:[%s3438_s1 + $0x2] ss:$0 sm:$0xff]  ;;  %v285_v22 = vld [vmem:[%s2331_s7 + $0xd8] sm:$0xff] }
  0x7c   : > { %v1142_v16 = vmul.f32 %v2395_v49, %v2902_v52  ;;  %v766_v17 = vadd.f32 %v734_v11, %v664_v25  ;;  %v531_v21 = vmul.f32 %v2926_v37, %v2744_v23  ;;  %v633_v28 = vmul.f32 %v2933_v2, %v2750_v32  ;;  %v2944_v23 = vld [vmem:[%s3438_s1] ss:$0 sm:$0xff] }
  0x7d   : > { %v1275_v15 = vadd.f32 %v1243_v4, %v1173_v35  ;;  %v969_v0 = vadd.f32 %v937_v19, %v867_v42  ;;  %v1041_v5 = vmul.f32 %v2390_v48, %v2909_v63  ;;  %v735_v20 = vmul.f32 %v2371_v38, %v2844_v53 }
  0x7e   : > { %v868_v40 = vadd.f32 %v836_v51, %v766_v17  ;;  %v563_v60 = vadd.f32 %v531_v21, %v429_v56  ;;  %v430_v1 = vmul.f32 %v2944_v23, %v2752_v45  ;;  %v532_v32 = vmul.f32 %v2926_v37, %v2754_v43 }
  0x7f   : > { %2055 = vmatmul.mubr.msk.f32.vlgmr.msra.gmra.mrb[0].mxu1 %vm209_vm1, %v1275_v15  ;;  %v1072_v8 = vadd.f32 %v1040_v46, %v969_v0  ;;  %v1244_v27 = vmul.f32 %v2407_v57, %v2919_v44  ;;  %v1143_v24 = vmul.f32 %v2395_v49, %v2921_v18  ;;  %v634_v29 = vmul.f32 %v2933_v2, %v2762_v58 }
  0x80   : > { %v970_v45 = vadd.f32 %v938_v41, %v868_v40  ;;  %v665_v11 = vadd.f32 %v633_v28, %v563_v60  ;;  %v837_v43 = vmul.f32 %v2376_v39, %v2846_v30  ;;  %v564_v61 = vadd.f32 %v532_v32, %v430_v1  ;;  %v286_v32 = vld [vmem:[%s2331_s7 + $0xe0] sm:$0xff] }
  0x81   : > { %v1174_v62 = vadd.f32 %v1142_v16, %v1072_v8  ;;  %v2963_v6 = vld [vmem:[#allocation2 + $0x150] sm:$0xff]  ;;  %v736_v50 = vmul.f32 %v2371_v38, %v2856_v14  ;;  %v316_v3 = vmax.f32 %v284_v12, 0.0  ;;  %v317_v4 = vmax.f32 %v285_v22, 0.0  ;;  %v2975_v46 = vld [vmem:[#allocation2 + $0x158] sm:$0xff]  ;;  %v287_v12 = vld [vmem:[%s2331_s7 + $0xe8] sm:$0xff] }
  0x82   : > { %v1073_v31 = vadd.f32 %v1041_v5, %v970_v45  ;;  %v1245_v19 = vmul.f32 %v2407_v57, %v2957_v9  ;;  %v767_v25 = vadd.f32 %v735_v20, %v665_v11  ;;  %v939_v58 = vmul.f32 %v2385_v47, %v2852_v59  ;;  %v2971_v51 = vld [vmem:[#allocation2 + $0x152] sm:$0xff]  ;;  %v2990_v15 = vld [vmem:[#allocation2 + $0x15a] sm:$0xff]  ;;  %v2999_v5 = vld [vmem:[%s3438_s1 + $0x6] ss:$0 sm:$0xff] }
  0x83   : > { %v1276_v41 = vadd.f32 %v1244_v27, %v1174_v62  ;;  %v666_v35 = vadd.f32 %v634_v29, %v564_v61  ;;  %v838_v42 = vmul.f32 %v2376_v39, %v2867_v36  ;;  %348 = vst.msk [vmem:[#allocation2 + $0x16a] sm:$0xff] %vm209_vm1, %v316_v3  ;;  %349 = vst.msk [vmem:[#allocation2 + $0x172] sm:$0xff] %vm209_vm1, %v317_v4  ;;  %v2988_v21 = vld [vmem:[#allocation2 + $0x154] sm:$0xff]  ;;  %v3006_v20 = vld [vmem:[%s3438_s1 + $0x3] ss:$0 sm:$0xff] }
  0x84   : > { %v431_v38 = vmul.f32 %v2944_v23, %v2792_v10  ;;  %v1175_v57 = vadd.f32 %v1143_v24, %v1073_v31  ;;  %v869_v56 = vadd.f32 %v837_v43, %v767_v25  ;;  %v1042_v16 = vmul.f32 %v2390_v48, %v2963_v6  ;;  %v3020_v8 = vld [vmem:[%s3438_s1 + $0x8] ss:$0 sm:$0xff]  ;;  %v3031_v24 = vld [vmem:[#allocation2 + $0x15c] sm:$0xff]  ;;  %v3038_v43 = vld [vmem:[%s3438_s1 + $0x4] ss:$0 sm:$0xff] }
  0x85   : > { %v940_v17 = vmul.f32 %v2385_v47, %v2885_v13  ;;  %2057 = vmatprep.mubr.msk.f32.mxu1 %vm209_vm1, %v1276_v41  ;;  %v1144_v39 = vmul.f32 %v2395_v49, %v2971_v51  ;;  %v768_v28 = vadd.f32 %v736_v50, %v666_v35  ;;  %v533_v10 = vmul.f32 %v2926_v37, %v2794_v54  ;;  %v3051_v41 = vld [vmem:[%s3438_s1 + $0x5] ss:$0 sm:$0xff] }
  0x86   : > { %v635_v48 = vmul.f32 %v2933_v2, %v2796_v33  ;;  %v1277_v0 = vadd.f32 %v1245_v19, %v1175_v57  ;;  %v971_v47 = vadd.f32 %v939_v58, %v869_v56  ;;  %v1043_v49 = vmul.f32 %v2999_v5, %v2975_v46 }
  0x87   : > { %v737_v54 = vmul.f32 %v3006_v20, %v2896_v34  ;;  %v870_v40 = vadd.f32 %v838_v42, %v768_v28  ;;  %v565_v33 = vadd.f32 %v533_v10, %v431_v38  ;;  %v432_v60 = vmul.f32 %v2944_v23, %v2806_v7  ;;  %v3027_v7 = vld [vmem:[%s3438_s1 + $0x7] ss:$0 sm:$0xff] }
  0x88   : > { %v534_v1 = vmul.f32 %v2926_v37, %v2817_v55  ;;  %2058 = vmatmul.mubr.msk.f32.gmra.mrb[2].mxu1 %vm209_vm1, %v1277_v0  ;;  %v1074_v22 = vadd.f32 %v1042_v16, %v971_v47  ;;  %v1246_v27 = vmul.f32 %v3020_v8, %v2988_v21  ;;  %v1145_v55 = vmul.f32 %v3027_v7, %v2990_v15 }
  0x89   : > { %v636_v29 = vmul.f32 %v2933_v2, %v2838_v26  ;;  %v972_v45 = vadd.f32 %v940_v17, %v870_v40  ;;  %v667_v11 = vadd.f32 %v635_v48, %v565_v33  ;;  %v839_v61 = vmul.f32 %v3038_v43, %v2902_v52 }
  0x8a   : > { %v566_v62 = vadd.f32 %v534_v1, %v432_v60  ;;  %v1176_v50 = vadd.f32 %v1144_v39, %v1074_v22  ;;  %v3042_v3 = vld [vmem:[#allocation2 + $0x168] sm:$0xff]  ;;  %v738_v4 = vmul.f32 %v3006_v20, %v2909_v63  ;;  %v318_v31 = vmax.f32 %v286_v32, 0.0  ;;  %v3059_v16 = vld [vmem:[#allocation2 + $0x170] sm:$0xff] }
  0x8b   : > { %v319_v19 = vmax.f32 %v287_v12, 0.0  ;;  %v1075_v26 = vadd.f32 %v1043_v49, %v972_v45  ;;  %v1247_v25 = vmul.f32 %v3020_v8, %v3031_v24  ;;  %v769_v58 = vadd.f32 %v737_v54, %v667_v11  ;;  %v3055_v42 = vld [vmem:[#allocation2 + $0x16a] sm:$0xff]  ;;  %v3074_v54 = vld [vmem:[#allocation2 + $0x172] sm:$0xff] }
  0x8c   : > { %v941_v35 = vmul.f32 %v3051_v41, %v2919_v44  ;;  %v1278_v38 = vadd.f32 %v1246_v27, %v1176_v50  ;;  %v668_v57 = vadd.f32 %v636_v29, %v566_v62  ;;  %v840_v56 = vmul.f32 %v3038_v43, %v2921_v18  ;;  %350 = vst.msk [vmem:[#allocation2 + $0x182] sm:$0xff] %vm209_vm1, %v318_v31  ;;  %v3072_v47 = vld [vmem:[#allocation2 + $0x16c] sm:$0xff]  ;;  %v289_v29 = vld [vmem:[%s2331_s7 + $0xf8] sm:$0xff] }
  0x8d   : > { %351 = vst.msk [vmem:[#allocation2 + $0x18a] sm:$0xff] %vm209_vm1, %v319_v19  ;;  %v433_v17 = vmul.f32 %v2944_v23, %v2844_v53  ;;  %v1177_v39 = vadd.f32 %v1145_v55, %v1075_v26  ;;  %v871_v28 = vadd.f32 %v839_v61, %v769_v58  ;;  %v1044_v10 = vmul.f32 %v2999_v5, %v3042_v3  ;;  %v3095_v61 = vld [vmem:[#allocation2 + $0x174] sm:$0xff] }
  0x8e   : > { %v942_v48 = vmul.f32 %v3051_v41, %v2957_v9  ;;  %2060 = vmatprep.mubr.msk.f32.mxu1 %vm209_vm1, %v1278_v38  ;;  %v1146_v0 = vmul.f32 %v3027_v7, %v3055_v42  ;;  %v770_v49 = vadd.f32 %v738_v4, %v668_v57  ;;  %v535_v53 = vmul.f32 %v2926_v37, %v2846_v30  ;;  %v288_v30 = vld [vmem:[%s2331_s7 + $0xf0] sm:$0xff] }
  0x8f   : > { %v637_v40 = vmul.f32 %v2933_v2, %v2852_v59  ;;  %v1279_v33 = vadd.f32 %v1247_v25, %v1177_v39  ;;  %v973_v60 = vadd.f32 %v941_v35, %v871_v28  ;;  %v1045_v1 = vmul.f32 %v2999_v5, %v3059_v16 }
  0x90   : > { %v739_v32 = vmul.f32 %v3006_v20, %v2963_v6  ;;  %v872_v12 = vadd.f32 %v840_v56, %v770_v49  ;;  %v567_v22 = vadd.f32 %v535_v53, %v433_v17  ;;  %v434_v27 = vmul.f32 %v2944_v23, %v2856_v14 }
  0x91   : > { %v536_v55 = vmul.f32 %v2926_v37, %v2867_v36  ;;  %2061 = vmatmul.mubr.msk.f32.gmra.mrb[4].mxu1 %vm209_vm1, %v1279_v33  ;;  %v1076_v59 = vadd.f32 %v1044_v10, %v973_v60  ;;  %v1248_v45 = vmul.f32 %v3020_v8, %v3072_v47  ;;  %v1147_v11 = vmul.f32 %v3027_v7, %v3074_v54 }
  0x92   : > { %v638_v62 = vmul.f32 %v2933_v2, %v2885_v13  ;;  %v974_v14 = vadd.f32 %v942_v48, %v872_v12  ;;  %v669_v50 = vadd.f32 %v637_v40, %v567_v22  ;;  %v841_v36 = vmul.f32 %v3038_v43, %v2971_v51 }
  0x93   : > { %v568_v4 = vadd.f32 %v536_v55, %v434_v27  ;;  %v1178_v31 = vadd.f32 %v1146_v0, %v1076_v59  ;;  %v3101_v19 = vld [vmem:[#allocation2 + $0x180] sm:$0xff]  ;;  %v740_v26 = vmul.f32 %v3006_v20, %v2975_v46  ;;  %v320_v25 = vmax.f32 %v288_v30, 0.0 }
  0x94   : > { %v321_v58 = vmax.f32 %v289_v29, 0.0  ;;  %v1077_v35 = vadd.f32 %v1045_v1, %v974_v14  ;;  %v1249_v38 = vmul.f32 %v3020_v8, %v3095_v61  ;;  %v771_v57 = vadd.f32 %v739_v32, %v669_v50  ;;  %v3109_v56 = vld [vmem:[#allocation2 + $0x182] sm:$0xff]  ;;  %v3128_v32 = vld [vmem:[#allocation2 + $0x18a] sm:$0xff] }
  0x95   : > { %v943_v13 = vmul.f32 %v3051_v41, %v2988_v21  ;;  %v1280_v17 = vadd.f32 %v1248_v45, %v1178_v31  ;;  %v670_v39 = vadd.f32 %v638_v62, %v568_v4  ;;  %v842_v28 = vmul.f32 %v3038_v43, %v2990_v15  ;;  %v3113_v10 = vld [vmem:[#allocation2 + $0x188] sm:$0xff]  ;;  %352 = vst.msk [vmem:[#allocation2 + $0x19a] sm:$0xff] %vm209_vm1, %v320_v25 }
  0x96   : > { %353 = vst.msk [vmem:[#allocation2 + $0x1a2] sm:$0xff] %vm209_vm1, %v321_v58  ;;  %v435_v48 = vmul.f32 %v2944_v23, %v2896_v34  ;;  %v1179_v0 = vadd.f32 %v1147_v11, %v1077_v35  ;;  %v873_v49 = vadd.f32 %v841_v36, %v771_v57  ;;  %v1046_v53 = vmul.f32 %v2999_v5, %v3101_v19  ;;  %v3126_v60 = vld [vmem:[#allocation2 + $0x184] sm:$0xff]  ;;  %v3147_v14 = vld [vmem:[#allocation2 + $0x18c] sm:$0xff] }
  0x97   : > { %v944_v40 = vmul.f32 %v3051_v41, %v3031_v24  ;;  %2063 = vmatprep.mubr.msk.f32.mxu1 %vm209_vm1, %v1280_v17  ;;  %v1148_v33 = vmul.f32 %v3027_v7, %v3109_v56  ;;  %v772_v1 = vadd.f32 %v740_v26, %v670_v39  ;;  %v537_v34 = vmul.f32 %v2926_v37, %v2902_v52 }
  0x98   : > { %v639_v12 = vmul.f32 %v2933_v2, %v2919_v44  ;;  %v1281_v22 = vadd.f32 %v1249_v38, %v1179_v0  ;;  %v975_v27 = vadd.f32 %v943_v13, %v873_v49  ;;  %v1047_v55 = vmul.f32 %v2999_v5, %v3113_v10 }
  0x99   : > { %v741_v30 = vmul.f32 %v3006_v20, %v3042_v3  ;;  %v874_v29 = vadd.f32 %v842_v28, %v772_v1  ;;  %v569_v59 = vadd.f32 %v537_v34, %v435_v48  ;;  %v436_v45 = vmul.f32 %v2944_v23, %v2909_v63 }
  0x9a   : > { %v538_v11 = vmul.f32 %v2926_v37, %v2921_v18  ;;  %2064 = vmatmul.mubr.msk.f32.gmra.mrb[6].mxu1 %vm209_vm1, %v1281_v22  ;;  %v1078_v52 = vadd.f32 %v1046_v53, %v975_v27  ;;  %v1250_v44 = vmul.f32 %v3020_v8, %v3126_v60  ;;  %v1149_v62 = vmul.f32 %v3027_v7, %v3128_v32 }
  0x9b   : > { %v640_v50 = vmul.f32 %v2933_v2, %v2957_v9  ;;  %v976_v36 = vadd.f32 %v944_v40, %v874_v29  ;;  %v671_v4 = vadd.f32 %v639_v12, %v569_v59  ;;  %v843_v63 = vmul.f32 %v3038_v43, %v3055_v42 }
  0x9c   : > { %v570_v18 = vadd.f32 %v538_v11, %v436_v45  ;;  %v1180_v31 = vadd.f32 %v1148_v33, %v1078_v52  ;;  %v3153_v26 = vld [vmem:[#allocation2 + $0x198] sm:$0xff]  ;;  %v742_v25 = vmul.f32 %v3006_v20, %v3059_v16  ;;  %v437_v58 = vmul.f32 %v2944_v23, %v2963_v6 }
  0x9d   : > { %v539_v35 = vmul.f32 %v2926_v37, %v2971_v51  ;;  %v1079_v38 = vadd.f32 %v1047_v55, %v976_v36  ;;  %v1251_v9 = vmul.f32 %v3020_v8, %v3147_v14  ;;  %v773_v57 = vadd.f32 %v741_v30, %v671_v4  ;;  %v3165_v39 = vld [vmem:[#allocation2 + $0x19a] sm:$0xff]  ;;  %v3186_v30 = vld [vmem:[#allocation2 + $0x1a2] sm:$0xff] }
  0x9e   : > { %v945_v13 = vmul.f32 %v3051_v41, %v3072_v47  ;;  %v1282_v17 = vadd.f32 %v1250_v44, %v1180_v31  ;;  %v3167_v28 = vld [vmem:[#allocation2 + $0x19c] sm:$0xff]  ;;  %v672_v48 = vadd.f32 %v640_v50, %v570_v18  ;;  %v844_v6 = vmul.f32 %v3038_v43, %v3074_v54  ;;  %v3190_v45 = vld [vmem:[#allocation2 + $0x1a4] sm:$0xff]  ;;  %v1012_v44 = vld [vmem:[#allocation2 + $0x1b0] sm:$0xff] }
  0x9f   : > { %v641_v51 = vmul.f32 %v2933_v2, %v2988_v21  ;;  %v1181_v0 = vadd.f32 %v1149_v62, %v1079_v38  ;;  %v875_v49 = vadd.f32 %v843_v63, %v773_v57  ;;  %v1048_v53 = vmul.f32 %v2999_v5, %v3153_v26  ;;  %v3175_v40 = vld [vmem:[#allocation2 + $0x1a0] sm:$0xff] }
  0xa0   : > { %2066 = vmatprep.mubr.msk.f32.mxu1 %vm209_vm1, %v1282_v17  ;;  %v774_v33 = vadd.f32 %v742_v25, %v672_v48  ;;  %v946_v1 = vmul.f32 %v3051_v41, %v3095_v61  ;;  %v571_v34 = vadd.f32 %v539_v35, %v437_v58  ;;  %v743_v12 = vmul.f32 %v3006_v20, %v3101_v19  ;;  %v1114_v58 = vld [vmem:[#allocation2 + $0x1b2] sm:$0xff] }
  0xa1   : > { %v1283_v22 = vadd.f32 %v1251_v9, %v1181_v0  ;;  %v977_v27 = vadd.f32 %v945_v13, %v875_v49  ;;  %v1150_v21 = vmul.f32 %v3027_v7, %v3165_v39  ;;  %v1252_v55 = vmul.f32 %v3020_v8, %v3167_v28  ;;  %v1216_v13 = vld [vmem:[#allocation2 + $0x1b4] sm:$0xff] }
  0xa2   : > { %v876_v29 = vadd.f32 %v844_v6, %v774_v33  ;;  %v1049_v59 = vmul.f32 %v2999_v5, %v3175_v40  ;;  %v673_v11 = vadd.f32 %v641_v51, %v571_v34  ;;  %v845_v19 = vmul.f32 %v3038_v43, %v3109_v56 }
  0xa3   : > { %2067 = vmatmul.mubr.msk.f32.gmra.mrb[8].mxu1 %vm209_vm1, %v1283_v22  ;;  %v1080_v52 = vadd.f32 %v1048_v53, %v977_v27  ;;  %v438_v62 = vmul.f32 %v2944_v23, %v2975_v46  ;;  %v540_v50 = vmul.f32 %v2926_v37, %v2990_v15  ;;  %v642_v36 = vmul.f32 %v2933_v2, %v3031_v24  ;;  %v1115_v22 = vld [vmem:[#allocation2 + $0x1ba] sm:$0xff] }
  0xa4   : > { %v978_v4 = vadd.f32 %v946_v1, %v876_v29  ;;  %v1151_v63 = vmul.f32 %v3027_v7, %v3186_v30  ;;  %v775_v18 = vadd.f32 %v743_v12, %v673_v11  ;;  %v947_v56 = vmul.f32 %v3051_v41, %v3126_v60  ;;  %v1013_v60 = vld [vmem:[#allocation2 + $0x1b8] sm:$0xff] }
  0xa5   : > { %v1182_v31 = vadd.f32 %v1150_v21, %v1080_v52  ;;  %v1253_v25 = vmul.f32 %v3020_v8, %v3190_v45  ;;  %v572_v46 = vadd.f32 %v540_v50, %v438_v62  ;;  %v744_v15 = vmul.f32 %v3006_v20, %v3113_v10  ;;  %v1217_v29 = vld [vmem:[#allocation2 + $0x1bc] sm:$0xff] }
  0xa6   : > { %v1081_v35 = vadd.f32 %v1049_v59, %v978_v4  ;;  %v877_v38 = vadd.f32 %v845_v19, %v775_v18  ;;  %v1050_v24 = vmul.f32 %v2999_v5, %v1012_v44  ;;  %v846_v9 = vmul.f32 %v3038_v43, %v3128_v32 }
  0xa7   : > { %v1284_v57 = vadd.f32 %v1252_v55, %v1182_v31  ;;  %v674_v17 = vadd.f32 %v642_v36, %v572_v46  ;;  %v439_v48 = vmul.f32 %v2944_v23, %v3042_v3  ;;  %v541_v6 = vmul.f32 %v2926_v37, %v3055_v42  ;;  %v1015_v31 = vld [vmem:[#allocation2 + $0x1d0] sm:$0xff] }
  0xa8   : > { %v1183_v51 = vadd.f32 %v1151_v63, %v1081_v35  ;;  %v979_v0 = vadd.f32 %v947_v56, %v877_v38  ;;  %v1152_v10 = vmul.f32 %v3027_v7, %v1114_v58  ;;  %v643_v49 = vmul.f32 %v2933_v2, %v3072_v47 }
  0xa9   : > { %2069 = vmatprep.mubr.msk.f32.mxu1 %vm209_vm1, %v1284_v57  ;;  %v776_v32 = vadd.f32 %v744_v15, %v674_v17  ;;  %v948_v53 = vmul.f32 %v3051_v41, %v3147_v14  ;;  %v573_v33 = vadd.f32 %v541_v6, %v439_v48  ;;  %v745_v3 = vmul.f32 %v3006_v20, %v3153_v26  ;;  %v1014_v26 = vld [vmem:[#allocation2 + $0x1c8] sm:$0xff]  ;;  %v1117_v15 = vld [vmem:[#allocation2 + $0x1d2] sm:$0xff] }
  0xaa   : > { %v1285_v1 = vadd.f32 %v1253_v25, %v1183_v51  ;;  %v1082_v34 = vadd.f32 %v1050_v24, %v979_v0  ;;  %v1254_v42 = vmul.f32 %v3020_v8, %v1216_v13  ;;  %v1051_v12 = vmul.f32 %v2999_v5, %v1013_v60 }
  0xab   : > { %v878_v27 = vadd.f32 %v846_v9, %v776_v32  ;;  %v675_v21 = vadd.f32 %v643_v49, %v573_v33  ;;  %v847_v47 = vmul.f32 %v3038_v43, %v3165_v39  ;;  %v440_v55 = vmul.f32 %v2944_v23, %v3059_v16  ;;  %v1116_v23 = vld [vmem:[#allocation2 + $0x1ca] sm:$0xff] }
  0xac   : > { %2070 = vmatmul.mubr.msk.f32.gmra.mrb[10].mxu1 %vm209_vm1, %v1285_v1  ;;  %v1184_v14 = vadd.f32 %v1152_v10, %v1082_v34  ;;  %v542_v59 = vmul.f32 %v2926_v37, %v3074_v54  ;;  %v644_v11 = vmul.f32 %v2933_v2, %v3095_v61  ;;  %v1153_v52 = vmul.f32 %v3027_v7, %v1115_v22  ;;  %v1218_v2 = vld [vmem:[#allocation2 + $0x1cc] sm:$0xff] }
  0xad   : > { %v980_v19 = vadd.f32 %v948_v53, %v878_v27  ;;  %v777_v44 = vadd.f32 %v745_v3, %v675_v21  ;;  %v949_v39 = vmul.f32 %v3051_v41, %v3167_v28  ;;  %v746_v50 = vmul.f32 %v3006_v20, %v3175_v40 }
  0xae   : > { %v1286_v62 = vadd.f32 %v1254_v42, %v1184_v14  ;;  %v574_v16 = vadd.f32 %v542_v59, %v440_v55  ;;  %v1255_v4 = vmul.f32 %v3020_v8, %v1217_v29  ;;  %v1052_v54 = vmul.f32 %v2999_v5, %v1014_v26 }
  0xaf   : > { %v1083_v36 = vadd.f32 %v1051_v12, %v980_v19  ;;  %v879_v37 = vadd.f32 %v847_v47, %v777_v44  ;;  %v848_v63 = vmul.f32 %v3038_v43, %v3186_v30  ;;  %v1154_v56 = vmul.f32 %v3027_v7, %v1116_v23  ;;  %v1219_v30 = vld [vmem:[#allocation2 + $0x1d4] sm:$0xff] }
  0xb0   : > { %2072 = vmatprep.mubr.msk.f32.mxu1 %vm209_vm1, %v1286_v62  ;;  %v676_v61 = vadd.f32 %v644_v11, %v574_v16  ;;  %v950_v20 = vmul.f32 %v3051_v41, %v3190_v45  ;;  %v1256_v46 = vmul.f32 %v3020_v8, %v1218_v2  ;;  %v1053_v38 = vmul.f32 %v2999_v5, %v1015_v31 }
  0xb1   : > { %v1185_v28 = vadd.f32 %v1153_v52, %v1083_v36  ;;  %v981_v18 = vadd.f32 %v949_v39, %v879_v37  ;;  %v1155_v9 = vmul.f32 %v3027_v7, %v1117_v15  ;;  %v1257_v41 = vmul.f32 %v3020_v8, %v1219_v30 }
  0xb2   : > { %v778_v25 = vadd.f32 %v746_v50, %v676_v61 }
  0xb3   : > { %v1287_v40 = vadd.f32 %v1255_v4, %v1185_v28  ;;  %v1084_v58 = vadd.f32 %v1052_v54, %v981_v18 }
  0xb4   : > { %v880_v35 = vadd.f32 %v848_v63, %v778_v25 }
  0xb5   : > { %2073 = vmatmul.mubr.msk.f32.gmra.mrb[12].mxu1 %vm209_vm1, %v1287_v40  ;;  %v1186_v43 = vadd.f32 %v1154_v56, %v1084_v58 }
  0xb6   : > { %v982_v24 = vadd.f32 %v950_v20, %v880_v35 }
  0xb7   : > { %v1288_v57 = vadd.f32 %v1256_v46, %v1186_v43 }
  0xb8   : > { %v1085_v13 = vadd.f32 %v1053_v38, %v982_v24 }
  0xb9   : > { %2075 = vmatprep.mubr.msk.f32.mxu1 %vm209_vm1, %v1288_v57 }
  0xba   : > { %v1187_v45 = vadd.f32 %v1155_v9, %v1085_v13 }
  0xbc   : > { %v1289_v17 = vadd.f32 %v1257_v41, %v1187_v45 }
  0xbe   : > { %2076 = vmatmul.mubr.msk.f32.gmra.mrb[14].mxu1 %vm209_vm1, %v1289_v17 }
 0x110   : > { %v2032_v5 = vpop.f32.mrb[0].mxu0 }
 0x111   : > { %v1618_v7 = vsel %vm1616_vm4, %v2032_v5, 0.0  ;;  %v1688_v8 = vmul.f32 %v2032_v5, %v2032_v5  ;;  %1790 = vst.msk [vmem:[%s3260_s23 + $0x8] sm:$0xff] %vm1616_vm4, %v2032_v5  ;;  %v1457_v60 = vpop.f32.mrb[1].mxu0 }
 0x112   : > { %v1617_v48 = vsel %vm1616_vm4, %v1457_v60, 0.0  ;;  %v1687_v6 = vmul.f32 %v1457_v60, %v1457_v60  ;;  %1789 = vst.msk [vmem:[%s3260_s23] sm:$0xff] %vm1616_vm4, %v1457_v60 }
 0x113   : > { %v1720_v51 = vsel %vm1616_vm4, %v1688_v8, 0.0  ;;  %v1619_v0 = vadd.f32 %v1618_v7, %v1617_v48 }
 0x114   : > { %v1719_v10 = vsel %vm1616_vm4, %v1687_v6, 0.0  ;;  %v2035_v49 = vpop.f32.mrb[2].mxu0 }
 0x115   : > { %v1721_v32 = vadd.f32 %v1720_v51, %v1719_v10  ;;  %1792 = vst.msk [vmem:[%s3260_s23 + $0x18] sm:$0xff] %vm1616_vm4, %v2035_v49  ;;  %v1467_v53 = vpop.f32.mrb[3].mxu0  ;;  %v1690_v33 = vmul.f32 %v2035_v49, %v2035_v49  ;;  %v1622_v42 = vsel %vm1616_vm4, %v2035_v49, 0.0 }
 0x116   : > { %v1620_v3 = vsel %vm1616_vm4, %v1467_v53, 0.0  ;;  %v1689_v1 = vmul.f32 %v1467_v53, %v1467_v53  ;;  %1791 = vst.msk [vmem:[%s3260_s23 + $0x10] sm:$0xff] %vm1616_vm4, %v1467_v53 }
 0x117   : > { %v1621_v34 = vadd.f32 %v1620_v3, %v1619_v0  ;;  %v1724_v21 = vsel %vm1616_vm4, %v1690_v33, 0.0 }
 0x118   : > { %v1722_v12 = vsel %vm1616_vm4, %v1689_v1, 0.0 }
 0x119   : > { %v1723_v22 = vadd.f32 %v1722_v12, %v1721_v32  ;;  %v1623_v27 = vadd.f32 %v1622_v42, %v1621_v34 }
 0x11b   : > { %v1725_v47 = vadd.f32 %v1724_v21, %v1723_v22 }
 0x11f   : > { %v2038_v55 = vpop.f32.mrb[4].mxu0 }
 0x120   : > { %1794 = vst.msk [vmem:[%s3260_s23 + $0x28] sm:$0xff] %vm1616_vm4, %v2038_v55  ;;  %v1477_v14 = vpop.f32.mrb[5].mxu0  ;;  %v1692_v29 = vmul.f32 %v2038_v55, %v2038_v55  ;;  %v1626_v19 = vsel %vm1616_vm4, %v2038_v55, 0.0 }
 0x121   : > { %v1624_v26 = vsel %vm1616_vm4, %v1477_v14, 0.0  ;;  %v1691_v59 = vmul.f32 %v1477_v14, %v1477_v14  ;;  %1793 = vst.msk [vmem:[%s3260_s23 + $0x20] sm:$0xff] %vm1616_vm4, %v1477_v14 }
 0x122   : > { %v1625_v11 = vadd.f32 %v1624_v26, %v1623_v27  ;;  %v1728_v62 = vsel %vm1616_vm4, %v1692_v29, 0.0 }
 0x123   : > { %v1726_v52 = vsel %vm1616_vm4, %v1691_v59, 0.0 }
 0x124   : > { %v1727_v44 = vadd.f32 %v1726_v52, %v1725_v47  ;;  %v1627_v39 = vadd.f32 %v1626_v19, %v1625_v11 }
 0x126   : > { %v1729_v23 = vadd.f32 %v1728_v62, %v1727_v44 }
 0x127   : > { %v2041_v16 = vpop.f32.mrb[6].mxu0 }
 0x128   : > { %1796 = vst.msk [vmem:[%s3260_s23 + $0x38] sm:$0xff] %vm1616_vm4, %v2041_v16  ;;  %v1487_v50 = vpop.f32.mrb[7].mxu0  ;;  %v1694_v36 = vmul.f32 %v2041_v16, %v2041_v16  ;;  %v1630_v2 = vsel %vm1616_vm4, %v2041_v16, 0.0 }
 0x129   : > { %v1628_v4 = vsel %vm1616_vm4, %v1487_v50, 0.0  ;;  %v1693_v37 = vmul.f32 %v1487_v50, %v1487_v50  ;;  %1795 = vst.msk [vmem:[%s3260_s23 + $0x30] sm:$0xff] %vm1616_vm4, %v1487_v50 }
 0x12a   : > { %v1629_v54 = vadd.f32 %v1628_v4, %v1627_v39  ;;  %v1732_v18 = vsel %vm1616_vm4, %v1694_v36, 0.0 }
 0x12b   : > { %v1730_v61 = vsel %vm1616_vm4, %v1693_v37, 0.0 }
 0x12c   : > { %v1731_v63 = vadd.f32 %v1730_v61, %v1729_v23  ;;  %v1631_v28 = vadd.f32 %v1630_v2, %v1629_v54 }
 0x12e   : > { %v1733_v56 = vadd.f32 %v1732_v18, %v1731_v63 }
 0x12f   : > { %v2044_v31 = vpop.f32.mrb[8].mxu0 }
 0x130   : > { %1798 = vst.msk [vmem:[%s3260_s23 + $0x48] sm:$0xff] %vm1616_vm4, %v2044_v31  ;;  %v1497_v25 = vpop.f32.mrb[9].mxu0  ;;  %v1696_v20 = vmul.f32 %v2044_v31, %v2044_v31  ;;  %v1634_v15 = vsel %vm1616_vm4, %v2044_v31, 0.0 }
 0x131   : > { %v1632_v40 = vsel %vm1616_vm4, %v1497_v25, 0.0  ;;  %v1695_v58 = vmul.f32 %v1497_v25, %v1497_v25  ;;  %1797 = vst.msk [vmem:[%s3260_s23 + $0x40] sm:$0xff] %vm1616_vm4, %v1497_v25 }
 0x132   : > { %v1633_v46 = vadd.f32 %v1632_v40, %v1631_v28  ;;  %v1736_v30 = vsel %vm1616_vm4, %v1696_v20, 0.0 }
 0x133   : > { %v1734_v35 = vsel %vm1616_vm4, %v1695_v58, 0.0 }
 0x134   : > { %v1735_v38 = vadd.f32 %v1734_v35, %v1733_v56  ;;  %v1635_v43 = vadd.f32 %v1634_v15, %v1633_v46 }
 0x136   : > { %v1737_v24 = vadd.f32 %v1736_v30, %v1735_v38 }
 0x138   : > { %v2047_v9 = vpop.f32.mrb[10].mxu0 }
 0x139   : > { %1800 = vst.msk [vmem:[%s3260_s23 + $0x58] sm:$0xff] %vm1616_vm4, %v2047_v9  ;;  %v1507_v57 = vpop.f32.mrb[11].mxu0  ;;  %v1698_v13 = vmul.f32 %v2047_v9, %v2047_v9  ;;  %v1638_v5 = vsel %vm1616_vm4, %v2047_v9, 0.0 }
 0x13a   : > { %v1636_v41 = vsel %vm1616_vm4, %v1507_v57, 0.0  ;;  %v1697_v45 = vmul.f32 %v1507_v57, %v1507_v57  ;;  %1799 = vst.msk [vmem:[%s3260_s23 + $0x50] sm:$0xff] %vm1616_vm4, %v1507_v57 }
 0x13b   : > { %v1637_v17 = vadd.f32 %v1636_v41, %v1635_v43  ;;  %v1740_v48 = vsel %vm1616_vm4, %v1698_v13, 0.0 }
 0x13c   : > { %v1738_v7 = vsel %vm1616_vm4, %v1697_v45, 0.0 }
 0x13d   : > { %v1739_v8 = vadd.f32 %v1738_v7, %v1737_v24  ;;  %v1639_v60 = vadd.f32 %v1638_v5, %v1637_v17 }
 0x13f   : > { %v1741_v6 = vadd.f32 %v1740_v48, %v1739_v8 }
 0x140   : > { %v2050_v51 = vpop.f32.mrb[12].mxu0 }
 0x141   : > { %1802 = vst.msk [vmem:[%s3260_s23 + $0x68] sm:$0xff] %vm1616_vm4, %v2050_v51  ;;  %v1517_v0 = vpop.f32.mrb[13].mxu0  ;;  %v1700_v10 = vmul.f32 %v2050_v51, %v2050_v51  ;;  %v1642_v33 = vsel %vm1616_vm4, %v2050_v51, 0.0 }
 0x142   : > { %v1640_v49 = vsel %vm1616_vm4, %v1517_v0, 0.0  ;;  %v1699_v32 = vmul.f32 %v1517_v0, %v1517_v0  ;;  %1801 = vst.msk [vmem:[%s3260_s23 + $0x60] sm:$0xff] %vm1616_vm4, %v1517_v0 }
 0x143   : > { %v1641_v53 = vadd.f32 %v1640_v49, %v1639_v60  ;;  %v1744_v42 = vsel %vm1616_vm4, %v1700_v10, 0.0 }
 0x144   : > { %v1742_v3 = vsel %vm1616_vm4, %v1699_v32, 0.0 }
 0x145   : > { %v1743_v1 = vadd.f32 %v1742_v3, %v1741_v6  ;;  %v1643_v34 = vadd.f32 %v1642_v33, %v1641_v53 }
 0x147   : > { %v1745_v12 = vadd.f32 %v1744_v42, %v1743_v1 }
 0x14a   : > { %v2053_v22 = vpop.f32.mrb[14].mxu0 }
 0x14b   : > { %1804 = vst.msk [vmem:[%s3260_s23 + $0x78] sm:$0xff] %vm1616_vm4, %v2053_v22  ;;  %v1527_v27 = vpop.f32.mrb[15].mxu0  ;;  %v1702_v21 = vmul.f32 %v2053_v22, %v2053_v22  ;;  %v1646_v29 = vsel %vm1616_vm4, %v2053_v22, 0.0 }
 0x14c   : > { %v1644_v47 = vsel %vm1616_vm4, %v1527_v27, 0.0  ;;  %v1701_v55 = vmul.f32 %v1527_v27, %v1527_v27  ;;  %1803 = vst.msk [vmem:[%s3260_s23 + $0x70] sm:$0xff] %vm1616_vm4, %v1527_v27 }
 0x14d   : > { %v1645_v14 = vadd.f32 %v1644_v47, %v1643_v34  ;;  %v1748_v19 = vsel %vm1616_vm4, %v1702_v21, 0.0 }
 0x14e   : > { %v1746_v26 = vsel %vm1616_vm4, %v1701_v55, 0.0 }
 0x14f   : > { %v1647_v59 = vadd.f32 %v1646_v29, %v1645_v14  ;;  %v1747_v11 = vadd.f32 %v1746_v26, %v1745_v12 }
 0x151   : > { %v1749_v52 = vadd.f32 %v1748_v19, %v1747_v11 }
 0x152   : > { %v2056_v44 = vpop.f32.mrb[0].mxu1 }
 0x153   : > { %1806 = vst.msk [vmem:[%s3260_s23 + $0x88] sm:$0xff] %vm1616_vm4, %v2056_v44  ;;  %v1537_v39 = vpop.f32.mrb[1].mxu1  ;;  %v1704_v62 = vmul.f32 %v2056_v44, %v2056_v44  ;;  %v1650_v36 = vsel %vm1616_vm4, %v2056_v44, 0.0 }
 0x154   : > { %v1648_v23 = vsel %vm1616_vm4, %v1537_v39, 0.0  ;;  %v1703_v16 = vmul.f32 %v1537_v39, %v1537_v39  ;;  %1805 = vst.msk [vmem:[%s3260_s23 + $0x80] sm:$0xff] %vm1616_vm4, %v1537_v39 }
 0x155   : > { %v1649_v50 = vadd.f32 %v1648_v23, %v1647_v59  ;;  %v1752_v2 = vsel %vm1616_vm4, %v1704_v62, 0.0 }
 0x156   : > { %v1750_v4 = vsel %vm1616_vm4, %v1703_v16, 0.0 }
 0x157   : > { %v1751_v37 = vadd.f32 %v1750_v4, %v1749_v52  ;;  %v1651_v54 = vadd.f32 %v1650_v36, %v1649_v50 }
 0x159   : > { %v1753_v61 = vadd.f32 %v1752_v2, %v1751_v37 }
 0x15b   : > { %v2059_v63 = vpop.f32.mrb[2].mxu1 }
 0x15c   : > { %1808 = vst.msk [vmem:[%s3260_s23 + $0x98] sm:$0xff] %vm1616_vm4, %v2059_v63  ;;  %v1547_v28 = vpop.f32.mrb[3].mxu1  ;;  %v1706_v18 = vmul.f32 %v2059_v63, %v2059_v63  ;;  %v1654_v20 = vsel %vm1616_vm4, %v2059_v63, 0.0 }
 0x15d   : > { %v1652_v56 = vsel %vm1616_vm4, %v1547_v28, 0.0  ;;  %v1705_v31 = vmul.f32 %v1547_v28, %v1547_v28  ;;  %1807 = vst.msk [vmem:[%s3260_s23 + $0x90] sm:$0xff] %vm1616_vm4, %v1547_v28 }
 0x15e   : > { %v1653_v25 = vadd.f32 %v1652_v56, %v1651_v54  ;;  %v1756_v15 = vsel %vm1616_vm4, %v1706_v18, 0.0 }
 0x15f   : > { %v1754_v40 = vsel %vm1616_vm4, %v1705_v31, 0.0 }
 0x160   : > { %v1755_v58 = vadd.f32 %v1754_v40, %v1753_v61  ;;  %v1655_v46 = vadd.f32 %v1654_v20, %v1653_v25 }
 0x162   : > { %v1757_v35 = vadd.f32 %v1756_v15, %v1755_v58 }
 0x164   : > { %v2062_v38 = vpop.f32.mrb[4].mxu1 }
 0x165   : > { %1810 = vst.msk [vmem:[%s3260_s23 + $0xa8] sm:$0xff] %vm1616_vm4, %v2062_v38  ;;  %v1557_v43 = vpop.f32.mrb[5].mxu1  ;;  %v1708_v30 = vmul.f32 %v2062_v38, %v2062_v38  ;;  %v1658_v13 = vsel %vm1616_vm4, %v2062_v38, 0.0 }
 0x166   : > { %v1656_v24 = vsel %vm1616_vm4, %v1557_v43, 0.0  ;;  %v1707_v9 = vmul.f32 %v1557_v43, %v1557_v43  ;;  %1809 = vst.msk [vmem:[%s3260_s23 + $0xa0] sm:$0xff] %vm1616_vm4, %v1557_v43 }
 0x167   : > { %v1657_v57 = vadd.f32 %v1656_v24, %v1655_v46  ;;  %v1760_v5 = vsel %vm1616_vm4, %v1708_v30, 0.0 }
 0x168   : > { %v1758_v41 = vsel %vm1616_vm4, %v1707_v9, 0.0 }
 0x169   : > { %v1759_v45 = vadd.f32 %v1758_v41, %v1757_v35  ;;  %v1659_v17 = vadd.f32 %v1658_v13, %v1657_v57 }
 0x16b   : > { %v1761_v7 = vadd.f32 %v1760_v5, %v1759_v45 }
 0x16d   : > { %v2065_v8 = vpop.f32.mrb[6].mxu1 }
 0x16e   : > { %1812 = vst.msk [vmem:[%s3260_s23 + $0xb8] sm:$0xff] %vm1616_vm4, %v2065_v8  ;;  %v1567_v60 = vpop.f32.mrb[7].mxu1  ;;  %v1710_v48 = vmul.f32 %v2065_v8, %v2065_v8  ;;  %v1662_v10 = vsel %vm1616_vm4, %v2065_v8, 0.0 }
 0x16f   : > { %v1660_v6 = vsel %vm1616_vm4, %v1567_v60, 0.0  ;;  %v1709_v51 = vmul.f32 %v1567_v60, %v1567_v60  ;;  %1811 = vst.msk [vmem:[%s3260_s23 + $0xb0] sm:$0xff] %vm1616_vm4, %v1567_v60 }
 0x170   : > { %v1661_v0 = vadd.f32 %v1660_v6, %v1659_v17  ;;  %v1764_v33 = vsel %vm1616_vm4, %v1710_v48, 0.0 }
 0x171   : > { %v1762_v49 = vsel %vm1616_vm4, %v1709_v51, 0.0 }
 0x172   : > { %v1763_v32 = vadd.f32 %v1762_v49, %v1761_v7  ;;  %v1663_v53 = vadd.f32 %v1662_v10, %v1661_v0 }
 0x174   : > { %v1765_v3 = vadd.f32 %v1764_v33, %v1763_v32 }
 0x176   : > { %v2068_v1 = vpop.f32.mrb[8].mxu1 }
 0x177   : > { %1814 = vst.msk [vmem:[%s3260_s23 + $0xc8] sm:$0xff] %vm1616_vm4, %v2068_v1  ;;  %v1577_v34 = vpop.f32.mrb[9].mxu1  ;;  %v1712_v42 = vmul.f32 %v2068_v1, %v2068_v1  ;;  %v1666_v21 = vsel %vm1616_vm4, %v2068_v1, 0.0 }
 0x178   : > { %v1664_v12 = vsel %vm1616_vm4, %v1577_v34, 0.0  ;;  %v1711_v22 = vmul.f32 %v1577_v34, %v1577_v34  ;;  %1813 = vst.msk [vmem:[%s3260_s23 + $0xc0] sm:$0xff] %vm1616_vm4, %v1577_v34 }
 0x179   : > { %v1665_v27 = vadd.f32 %v1664_v12, %v1663_v53  ;;  %v1768_v29 = vsel %vm1616_vm4, %v1712_v42, 0.0 }
 0x17a   : > { %v1766_v47 = vsel %vm1616_vm4, %v1711_v22, 0.0 }
 0x17b   : > { %v1767_v55 = vadd.f32 %v1766_v47, %v1765_v3  ;;  %v1667_v14 = vadd.f32 %v1666_v21, %v1665_v27 }
 0x17d   : > { %v1769_v26 = vadd.f32 %v1768_v29, %v1767_v55 }
 0x17f   : > { %v2071_v59 = vpop.f32.mrb[10].mxu1 }
 0x180   : > { %1816 = vst.msk [vmem:[%s3260_s23 + $0xd8] sm:$0xff] %vm1616_vm4, %v2071_v59  ;;  %v1587_v11 = vpop.f32.mrb[11].mxu1  ;;  %v1714_v19 = vmul.f32 %v2071_v59, %v2071_v59  ;;  %v1670_v62 = vsel %vm1616_vm4, %v2071_v59, 0.0 }
 0x181   : > { %v1668_v52 = vsel %vm1616_vm4, %v1587_v11, 0.0  ;;  %v1713_v44 = vmul.f32 %v1587_v11, %v1587_v11  ;;  %1815 = vst.msk [vmem:[%s3260_s23 + $0xd0] sm:$0xff] %vm1616_vm4, %v1587_v11 }
 0x182   : > { %v1669_v39 = vadd.f32 %v1668_v52, %v1667_v14  ;;  %v1772_v36 = vsel %vm1616_vm4, %v1714_v19, 0.0 }
 0x183   : > { %v1770_v23 = vsel %vm1616_vm4, %v1713_v44, 0.0 }
 0x184   : > { %v1771_v16 = vadd.f32 %v1770_v23, %v1769_v26  ;;  %v1671_v50 = vadd.f32 %v1670_v62, %v1669_v39 }
 0x186   : > { %v1773_v4 = vadd.f32 %v1772_v36, %v1771_v16 }
 0x188   : > { %v2074_v37 = vpop.f32.mrb[12].mxu1 }
 0x189   : > { %1818 = vst.msk [vmem:[%s3260_s23 + $0xe8] sm:$0xff] %vm1616_vm4, %v2074_v37  ;;  %v1597_v54 = vpop.f32.mrb[13].mxu1  ;;  %v1716_v2 = vmul.f32 %v2074_v37, %v2074_v37  ;;  %v1674_v18 = vsel %vm1616_vm4, %v2074_v37, 0.0 }
 0x18a   : > { %v1672_v61 = vsel %vm1616_vm4, %v1597_v54, 0.0  ;;  %v1715_v63 = vmul.f32 %v1597_v54, %v1597_v54  ;;  %1817 = vst.msk [vmem:[%s3260_s23 + $0xe0] sm:$0xff] %vm1616_vm4, %v1597_v54 }
 0x18b   : > { %v1673_v28 = vadd.f32 %v1672_v61, %v1671_v50  ;;  %v1776_v20 = vsel %vm1616_vm4, %v1716_v2, 0.0 }
 0x18c   : > { %v1774_v56 = vsel %vm1616_vm4, %v1715_v63, 0.0 }
 0x18d   : > { %v1775_v31 = vadd.f32 %v1774_v56, %v1773_v4  ;;  %v1675_v25 = vadd.f32 %v1674_v18, %v1673_v28 }
 0x18f   : > { %v1777_v40 = vadd.f32 %v1776_v20, %v1775_v31 }
 0x191   : > { %v2077_v58 = vpop.f32.mrb[14].mxu1 }
 0x192   : > { %1820 = vst.msk [vmem:[%s3260_s23 + $0xf8] sm:$0xff] %vm1616_vm4, %v2077_v58  ;;  %v1607_v46 = vpop.f32.mrb[15].mxu1  ;;  %v1718_v15 = vmul.f32 %v2077_v58, %v2077_v58  ;;  %v1678_v30 = vsel %vm1616_vm4, %v2077_v58, 0.0 }
 0x193   : > { %v1676_v35 = vsel %vm1616_vm4, %v1607_v46, 0.0  ;;  %v1717_v38 = vmul.f32 %v1607_v46, %v1607_v46  ;;  %1819 = vst.msk [vmem:[%s3260_s23 + $0xf0] sm:$0xff] %vm1616_vm4, %v1607_v46 }
 0x194   : > { %v1677_v43 = vadd.f32 %v1676_v35, %v1675_v25  ;;  %v1780_v13 = vsel %vm1616_vm4, %v1718_v15, 0.0 }
 0x195   : > { %v1778_v24 = vsel %vm1616_vm4, %v1717_v38, 0.0 }
 0x196   : > { %v1679_v9 = vadd.f32 %v1678_v30, %v1677_v43  ;;  %v1779_v57 = vadd.f32 %v1778_v24, %v1777_v40 }
 0x198   : > { %v1680_v41 = vrot.slane %v1679_v9, 4  ;;  %v1781_v45 = vadd.f32 %v1780_v13, %v1779_v57 }
 0x19a   : > { %v1681_v17 = vadd.f32 %v1680_v41, %v1679_v9  ;;  %v1782_v5 = vrot.slane %v1781_v45, 4 }
 0x19c   : > { %v1682_v7 = vrot.slane %v1681_v17, 2  ;;  %v1783_v8 = vadd.f32 %v1782_v5, %v1781_v45 }
 0x19e   : > { %v1683_v60 = vadd.f32 %v1682_v7, %v1681_v17  ;;  %v1784_v48 = vrot.slane %v1783_v8, 2 }
 0x1a0   : > { %v1684_v6 = vrot.slane %v1683_v60, 1  ;;  %v1785_v51 = vadd.f32 %v1784_v48, %v1783_v8 }
 0x1a2   : > { %v1685_v0 = vadd.f32 %v1684_v6, %v1683_v60  ;;  %v1786_v10 = vrot.slane %v1785_v51, 1 }
 0x1a4   : > { %v1787_v49 = vadd.f32 %v1786_v10, %v1785_v51  ;;  %1822 = vst.msk [vmem:[%s198_s28] sm:$0x1] %vm1821_vm5, %v1685_v0 }
 0x1a6   : > { %1823 = vst.msk [vmem:[%s198_s28 + $0x1] sm:$0x1] %vm1821_vm5, %v1787_v49 }
 0x1a7   : > { %2142 = shalt.err (!%p2139_p3)
}
 0x1a8   : > { %s2143_s14 = scalar_lea.hbm %s3395_s9, 32  ;;  %s2147_s22 = scalar_lea.hbm %s3441_s4, 64 }
 0x1a9   : > { %p2144_p4 = scmp.ne.s32.totalorder %s3395_s9, %s2143_s14  ;;  %p2148_p9 = scmp.lt.u32.totalorder %s3395_s9, %s3441_s4 }
 0x1aa   : > { %p2149_p10 = scmp.lt.u32.totalorder %s2147_s22, %s2143_s14  ;;  %p2151_p12 = scmp.lt.u32.totalorder %s2143_s14, %s3395_s9 }
 0x1ab   : > { %p2145_p7 = pnand %p2144_p4, %p2258_p5 }
 0x1ac   : > { %p2150_p11 = por %p2149_p10, %p2148_p9 }
 0x1ad   : > { %p2146_p8 = pneg %p2145_p7 }
 0x1ae   : > { %p2152_p13 = por %p2151_p12, %p2150_p11 }
 0x1b0   : > { %p2153_p0 = pnand %p2152_p13, %p2146_p8 }
 0x1b2   : > { %2156 = shalt.err (!%p2153_p0)
}
 0x1b3   : > { %2080 = dma.vmem_to_hbm [thread:$0]  (%p2258_p5), %s3397_s5, 32, %s3395_s9, %s1830_s10  }
 0x1b4 PF: > { %p2086_p1 = scmp.ge.s32.totalorder %s2191_s18, 2  ;;  %s1866_s30 = sand.u32 1, %s2179_s15  }
 0x1b5   : > { %s1867_s27 = scalar_lea.sflag [#allocation4], %s1866_s30 }
 0x1b6   : > { %p2083_p2 = pnand %p2086_p1, %p2262_p6 }
 0x1b8   : > { %2174 = dma.done.wait (!%p2083_p2), %s1867_s27, 32  }
 0x1b9   : > { %2176 = vsyncadd (!%p2083_p2), %s1867_s27, 4294967264  ;;  %p15_p3 = scmp.ge.s32.totalorder %s2245_s21, 4   ;;  %s3444_s15 = smov %s2183_s16 }
 0x1ba   : > { %s3445_s16 = smov %s2187_s17  ;;  %s3446_s17 = smov %s2256_s24 }
 0x1bb   : > { %s3447_s18 = smov %s2245_s21  ;;  %17 = sbr.rel (!%p15_p3) target bundleno = 3 (0x3), region = 90 }
 0x1c2   :  { %1872 = vsyncpa [#allocation4], 1 }
 0x1c3   :  { %1874 = vsyncpa [#allocation4 + $0x1], 1 }

</bundles_post_ra>
